<compile_context>
chip_gen: v7x
topology: tpu7x:2x2x1
jax: 0.10.0
libtpu: 0.0.40
codegen_flags: <defaults>
</compile_context>

<pallas_src>
import functools
import math

import jax
import jax.numpy as jnp
from jax.experimental import pallas as pl
from jax.experimental.pallas import tpu as pltpu

EPS = 1e-5            # PyTorch InstanceNorm default eps
NEG = -3.0e38         # "-inf" fill for max-pool padding (f32-representable)
LEAKY_SLOPE = 0.2
LANE = 128            # channel padding target (lane width)
MAX_POOL_TILE = 512   # layer-0 pool rows per time tile (x3 conv rows per tile)


def _vmem_limit(*byte_counts):
    need = sum(int(b) for b in byte_counts)
    return int(min(100 * 1024 * 1024, max(2 * need, 16 * 1024 * 1024)))


# ---------------------------------------------------------------------------
# Layer 0: sinc conv (single 256-deep matmul per row) + |.| + maxpool(3,3,1)
# with streamed InstanceNorm statistics.  Norm + LeakyReLU are deferred.
# ---------------------------------------------------------------------------
def _sinc_layer0_kernel(xf_ref, w_ref, o_ref, stats_ref, ybuf_ref, *,
                        pool_tile, t_pool):
    # xf_ref   : (1, 3*pool_tile, FW) bf16  framed waveform tile
    # w_ref    : (FW, 128) bf16             packed sinc filter bank
    # o_ref    : (1, pool_tile, 128) bf16   pre-norm pooled |conv| output
    # stats_ref: (1, 1, 2, 128) f32         per-tile (sum, sumsq) of valid rows
    # ybuf_ref : (3*pool_tile, 128) f32     scratch holding |conv| rows
    y = jnp.dot(xf_ref[0], w_ref[...], preferred_element_type=jnp.float32)
    ybuf_ref[...] = jnp.abs(y)

    # MaxPool1d(3,3,pad=1): pool row q covers conv rows 3q-1..3q+1.  The framed
    # input is shifted by one frame, so scratch row 3q+k is conv row 3q+k-1,
    # and out-of-range conv rows were zeroed host-side (|conv| >= 0, so a zero
    # pad is equivalent to the reference -inf pad).
    p0 = ybuf_ref[pl.ds(0, pool_tile, 3), :]
    p1 = ybuf_ref[pl.ds(1, pool_tile, 3), :]
    p2 = ybuf_ref[pl.ds(2, pool_tile, 3), :]
    pooled = jnp.maximum(jnp.maximum(p0, p1), p2)
    o_ref[0] = pooled.astype(o_ref.dtype)

    # Streaming InstanceNorm stats over the *valid* pool rows of this tile.
    row = (jax.lax.broadcasted_iota(jnp.int32, (pool_tile, 1), 0)
           + pl.program_id(1) * pool_tile)
    masked = jnp.where(row < t_pool, pooled, 0.0)
    s = jnp.sum(masked, axis=0, keepdims=True)
    ss = jnp.sum(masked * masked, axis=0, keepdims=True)
    stats_ref[0, 0] = jnp.concatenate([s, ss], axis=0)


def sinc_layer0(wave, w_oik, *, stride=5):
    """SincConv1d(stride=5,'same') + |.| + MaxPool1d(3,3,pad=1), time-tiled.

    Returns (pooled, stats, t_pool):
      pooled: (B, n_tiles*PT, 128) bf16 — rows >= t_pool are unused padding
      stats : (B, n_tiles, 2, 128) f32 partial (sum, sumsq) per tile
    InstanceNorm + LeakyReLU are deferred into the next layer's kernel.
    """
    B, T = wave.shape
    cout, cin, K = w_oik.shape
    assert cin == 1 and K % 2 == 1 and cout <= LANE
    pad = K // 2
    t_conv = (T + 2 * pad - K) // stride + 1
    t_pool = (t_conv - 1) // 3 + 1
    pt = min(MAX_POOL_TILE, -(-t_pool // 16) * 16)
    n_tiles = -(-t_pool // pt)
    nf = n_tiles * 3 * pt                 # frames (= conv rows, shifted by +1)
    fw = -(-K // LANE) * LANE             # frame width: 251 -> 256 lanes

    # Framed ("all taps grouped") input: frame i holds the K (+ lane pad)
    # samples feeding conv row i-1, so the whole filter is one 256-deep MXU
    # contraction per row instead of 51 five-deep matmuls.  Frames for
    # out-of-range conv rows are zeroed (safe pool padding since |conv| >= 0).
    lpad = pad + stride
    rpad = max(0, (nf - 1) * stride + fw - lpad - T)
    wpad = jnp.pad(wave.astype(jnp.float32), ((0, 0), (lpad, rpad)))
    idx = jnp.arange(nf)[:, None] * stride + jnp.arange(fw)[None, :]
    xf = wpad[:, idx]                                      # (B, nf, fw)
    fvalid = (jnp.arange(nf) >= 1) & (jnp.arange(nf) <= t_conv)
    xf = jnp.where(fvalid[None, :, None], xf, 0.0).astype(jnp.bfloat16)

    # Packed filter bank: wp[j, o] = w[o, 0, j]; zero rows j>=K, cols o>=cout.
    wp = jnp.zeros((fw, LANE), jnp.float32)
    wp = wp.at[:K, :cout].set(w_oik[:, 0, :].T).astype(jnp.bfloat16)

    kernel = functools.partial(_sinc_layer0_kernel, pool_tile=pt, t_pool=t_pool)
    vlim = _vmem_limit(2 * 3 * pt * fw * 2,        # double-buffered framed input
                       fw * LANE * 2,              # resident weight
                       2 * pt * LANE * 2,          # double-buffered output
                       2 * 3 * pt * LANE * 4,      # |conv| scratch + matmul SSA
                       8 * LANE * 4)               # stats
    # TODO(synk): if input DMA becomes exposed at realistic T, raise the framed
    # input spec to pipeline_mode=pl.Buffered(3).
    pooled, stats = pl.pallas_call(
        kernel,
        out_shape=(jax.ShapeDtypeStruct((B, n_tiles * pt, LANE), jnp.bfloat16),
                   jax.ShapeDtypeStruct((B, n_tiles, 2, LANE), jnp.float32)),
        grid=(B, n_tiles),
        in_specs=[
            pl.BlockSpec((1, 3 * pt, fw), lambda b, t: (b, t, 0)),
            pl.BlockSpec((fw, LANE), lambda b, t: (0, 0)),
        ],
        out_specs=[
            pl.BlockSpec((1, pt, LANE), lambda b, t: (b, t, 0)),
            pl.BlockSpec((1, 1, 2, LANE), lambda b, t: (b, t, 0, 0)),
        ],
        scratch_shapes=[pltpu.VMEM((3 * pt, LANE), jnp.float32)],
        compiler_params=pltpu.CompilerParams(
            dimension_semantics=("parallel", "parallel"),
            vmem_limit_bytes=vlim),
    )(xf, wp)
    return pooled, stats, t_pool


def deferred_instance_affine(stats, gamma, beta, count):
    """Fold InstanceNorm(pooled) into per-sample (scale, shift):
    norm(x) = x*scale + shift, scale = gamma/sqrt(var+eps)."""
    s = jnp.sum(stats[:, :, 0, :], axis=1)          # (B, 128)
    ss = jnp.sum(stats[:, :, 1, :], axis=1)
    mean = s / count
    var = jnp.maximum(ss / count - mean * mean, 0.0)
    inv = jax.lax.rsqrt(var + EPS)
    cout = gamma.shape[0]
    g = jnp.pad(gamma.astype(jnp.float32), (0, LANE - cout), constant_values=1.0)
    b = jnp.pad(beta.astype(jnp.float32), (0, LANE - cout))
    scale = g[None, :] * inv
    shift = b[None, :] - mean * scale
    return jnp.stack([scale, shift], axis=1)        # (B, 2, 128)


# ---------------------------------------------------------------------------
# Layers 1-2: (optional deferred input norm+act) -> conv1d(stride=1,'same')
# -> maxpool(3,3,1) -> InstanceNorm -> LeakyReLU, fused per batch element.
# ---------------------------------------------------------------------------
def _conv_block_kernel(x_ref, w_ref, p_ref, a_ref, o_ref, acc_ref, *,
                       fuse_input_norm, n_taps, pad, t_in, t_conv, t_pool):
    # x_ref  : (1, P_in, 128) bf16    previous activation, rows [0, t_in) valid
    # w_ref  : (n_taps, 128, 128) bf16 per-tap conv weight
    # p_ref  : (8, 128) f32           row0 bias, row1 gamma, row2 beta
    # a_ref  : (1, 2, 128) f32        per-sample deferred input (scale, shift)
    # o_ref  : (1, t_pool, 128)
    # acc_ref: (t_pad, 128) f32       conv accumulator + pool padding rows
    cp = o_ref.shape[-1]
    acc_ref[pl.ds(0, 1), :] = jnp.full((1, cp), NEG, jnp.float32)
    acc_ref[pl.ds(1, t_conv), :] = jnp.zeros((t_conv, cp), jnp.float32)
    if 3 * t_pool > t_conv + 1:
        acc_ref[pl.ds(t_conv + 1, 3 * t_pool - t_conv - 1), :] = jnp.full(
            (3 * t_pool - t_conv - 1, cp), NEG, jnp.float32)

    if fuse_input_norm:
        in_scale = a_ref[0, 0:1, :]
        in_shift = a_ref[0, 1:2, :]

    # conv1d (stride 1, 'same'): n_taps accumulated 128-deep MXU matmuls; the
    # K//2 zero padding is handled by clipping each tap's row range in-kernel,
    # so the previous layer's output is consumed straight from HBM (no jnp.pad
    # round trip), accumulating directly into the pool scratch.
    for j in range(n_taps):
        r_lo = max(0, pad - j)
        r_hi = min(t_conv, t_in + pad - j)
        n = r_hi - r_lo
        if n <= 0:
            continue
        xin = x_ref[0, pl.ds(r_lo + j - pad, n), :]
        if fuse_input_norm:
            v = xin.astype(jnp.float32) * in_scale + in_shift
            v = jnp.where(v >= 0, v, LEAKY_SLOPE * v).astype(jnp.bfloat16)
        else:
            v = xin
        acc_ref[pl.ds(1 + r_lo, n), :] += jnp.dot(
            v, w_ref[j], preferred_element_type=jnp.float32)

    # MaxPool1d(3,3,pad=1): scratch row 3q+k is conv row 3q+k-1 (row 0 / tail
    # rows hold the -inf padding).  Conv bias (constant per channel over time)
    # commutes with the max, so it is added to the pooled result.
    p0 = acc_ref[pl.ds(0, t_pool, 3), :]
    p1 = acc_ref[pl.ds(1, t_pool, 3), :]
    p2 = acc_ref[pl.ds(2, t_pool, 3), :]
    pooled = jnp.maximum(jnp.maximum(p0, p1), p2) + p_ref[0:1, :]

    # InstanceNorm1d(affine) over time (biased variance) + LeakyReLU(0.2).
    mean = jnp.mean(pooled, axis=0, keepdims=True)
    var = jnp.mean((pooled - mean) ** 2, axis=0, keepdims=True)
    xn = (pooled - mean) * jax.lax.rsqrt(var + EPS)
    xn = xn * p_ref[1:2, :] + p_ref[2:3, :]
    o_ref[0] = jnp.where(xn >= 0, xn, LEAKY_SLOPE * xn).astype(o_ref.dtype)


def conv_block(x_btc, t_valid, w_oik, bias, gamma, beta, *, in_affine,
               out_dtype):
    """One SincNet block for the stride-1 layers.  x_btc: (B, P_in, 128) bf16,
    rows [0, t_valid) valid.  If `in_affine` (B,2,128) is given, the previous
    layer's deferred InstanceNorm + LeakyReLU is applied to the input on the
    fly inside the kernel."""
    B, p_in, c = x_btc.shape
    assert c == LANE
    cout, cin, K = w_oik.shape
    assert cout <= LANE and cin <= LANE and K % 2 == 1
    pad = K // 2
    t_in = t_valid
    t_conv = t_in                      # stride 1 + 'same' padding, K odd
    t_pool = (t_conv - 1) // 3 + 1
    t_pad = max(3 * t_pool, t_conv + 1)

    w = jnp.pad(w_oik.astype(jnp.float32),
                ((0, LANE - cout), (0, LANE - cin), (0, 0)))
    wt = jnp.transpose(w, (2, 1, 0)).astype(jnp.bfloat16)   # (K, Cin_p, Cout_p)

    # merged per-layer parameter block: row0 bias, row1 gamma, row2 beta
    pblk = jnp.zeros((8, LANE), jnp.float32)
    pblk = pblk.at[0, :cout].set(bias.astype(jnp.float32))
    pblk = pblk.at[1, :].set(jnp.pad(gamma.astype(jnp.float32),
                                     (0, LANE - cout), constant_values=1.0))
    pblk = pblk.at[2, :cout].set(beta.astype(jnp.float32))

    fuse = in_affine is not None
    if in_affine is None:
        in_affine = jnp.zeros((B, 2, LANE), jnp.float32)

    kernel = functools.partial(_conv_block_kernel, fuse_input_norm=fuse,
                               n_taps=K, pad=pad, t_in=t_in, t_conv=t_conv,
                               t_pool=t_pool)
    out_isz = jnp.dtype(out_dtype).itemsize
    vlim = _vmem_limit(2 * p_in * LANE * 2, K * LANE * LANE * 2,
                       2 * t_pool * LANE * out_isz, t_pad * LANE * 4,
                       2 * t_conv * LANE * 4, 16 * LANE * 4)
    # TODO(synk): for very long inputs (t_conv >~ 50k) add a time-tiling grid
    # axis here too (streamed InstanceNorm stats, as done for layer 0), and
    # pack tap pairs to a 256-deep contraction on v6e/v7x.
    return pl.pallas_call(
        kernel,
        out_shape=jax.ShapeDtypeStruct((B, t_pool, LANE), out_dtype),
        grid=(B,),
        in_specs=[
            pl.BlockSpec((1, p_in, LANE), lambda b: (b, 0, 0)),
            pl.BlockSpec((K, LANE, LANE), lambda b: (0, 0, 0)),
            pl.BlockSpec((8, LANE), lambda b: (0, 0)),
            pl.BlockSpec((1, 2, LANE), lambda b: (b, 0, 0)),
        ],
        out_specs=pl.BlockSpec((1, t_pool, LANE), lambda b: (b, 0, 0)),
        scratch_shapes=[pltpu.VMEM((t_pad, LANE), jnp.float32)],
        compiler_params=pltpu.CompilerParams(
            dimension_semantics=("parallel",), vmem_limit_bytes=vlim),
    )(x_btc, wt, pblk, in_affine)


# ---------------------------------------------------------------------------
# Waveform normalization (InstanceNorm1d(1, affine)) — plain JAX, XLA fuses it.
# ---------------------------------------------------------------------------
def waveform_normalize(x, gamma, beta):
    x = x.astype(jnp.float32)
    mean = jnp.mean(x, axis=1, keepdims=True)
    var = jnp.mean((x - mean) ** 2, axis=1, keepdims=True)
    return (x - mean) * jax.lax.rsqrt(var + EPS) * gamma + beta


# ---------------------------------------------------------------------------
# Parameter construction (deterministic, mirrors the PyTorch __init__)
# ---------------------------------------------------------------------------
def make_sincnet_params(key, out_channels=(80, 60, 60), kernel_size=(251, 5, 5),
                        sample_rate=16000.0, min_low_hz=50.0, min_band_hz=50.0,
                        low_hz=30.0):
    params = {}
    params["wave_gamma"] = jnp.ones((1,), jnp.float32)
    params["wave_beta"] = jnp.zeros((1,), jnp.float32)

    # --- SincConv1d weight synthesized from mel-spaced (low_hz_, band_hz_) ---
    C0, K0 = out_channels[0], kernel_size[0]
    to_mel = lambda hz: 2595.0 * jnp.log10(1.0 + hz / 700.0)
    to_hz = lambda mel: 700.0 * (10.0 ** (mel / 2595.0) - 1.0)
    high_hz = sample_rate / 2 - (min_low_hz + min_band_hz)
    hz = to_hz(jnp.linspace(to_mel(jnp.float32(low_hz)),
                            to_mel(jnp.float32(high_hz)), C0 + 1))
    low_hz_ = hz[:-1][:, None]
    band_hz_ = (hz[1:] - hz[:-1])[:, None]
    window = 0.54 - 0.46 * jnp.cos(
        2.0 * math.pi * jnp.linspace(0.0, K0 / 2 - 1, int(K0 / 2)) / K0)
    sinct = 2.0 * math.pi * jnp.arange(-(K0 // 2), 0, dtype=jnp.float32) / sample_rate
    lo = min_low_hz + jnp.abs(low_hz_)
    hi = jnp.clip(lo + min_band_hz + jnp.abs(band_hz_), min_low_hz, sample_rate / 2)
    bp_left = (jnp.sin(hi * sinct) - jnp.sin(lo * sinct)) / (sinct / 2.0) * window
    bp_center = (hi - lo) * 2.0
    bp_right = bp_left[:, ::-1]
    band_pass = jnp.concatenate([bp_left, bp_center, bp_right], axis=1) / bp_center
    params["conv_w"] = [band_pass.reshape(C0, 1, K0).astype(jnp.float32)]
    params["conv_b"] = [jnp.zeros((C0,), jnp.float32)]       # SincConv: bias=False

    # --- remaining Conv1d layers: PyTorch-style uniform(-1/sqrt(fan_in), ..) ---
    in_c = C0
    for i in range(1, len(out_channels)):
        C, K = out_channels[i], kernel_size[i]
        key, k1, k2 = jax.random.split(key, 3)
        bound = 1.0 / math.sqrt(in_c * K)
        params["conv_w"].append(
            jax.random.uniform(k1, (C, in_c, K), jnp.float32, -bound, bound))
        params["conv_b"].append(
            jax.random.uniform(k2, (C,), jnp.float32, -bound, bound))
        in_c = C

    params["in_gamma"] = [jnp.ones((c,), jnp.float32) for c in out_channels]
    params["in_beta"] = [jnp.zeros((c,), jnp.float32) for c in out_channels]
    return params


def sincnet_forward(params, waveforms):
    """waveforms: (B, T) f32 -> (B, 60, T_out), matching PyTorch (N, C, L) for
    the default config out_channels=[80,60,60], kernel=[251,5,5], stride=[5,1,1],
    max_pool=3, padding_same=True."""
    x = waveform_normalize(waveforms, params["wave_gamma"], params["wave_beta"])

    # layer 0: sinc conv + |.| + pool; its InstanceNorm + LeakyReLU are deferred
    pooled0, stats0, t_pool0 = sinc_layer0(x, params["conv_w"][0])
    aff0 = deferred_instance_affine(stats0, params["in_gamma"][0],
                                    params["in_beta"][0], t_pool0)

    # layer 1: (deferred layer-0 norm+act) -> conv -> pool -> norm -> act (bf16)
    x1 = conv_block(pooled0, t_pool0, params["conv_w"][1], params["conv_b"][1],
                    params["in_gamma"][1], params["in_beta"][1],
                    in_affine=aff0, out_dtype=jnp.bfloat16)

    # layer 2: conv -> pool -> norm -> act (f32)
    x2 = conv_block(x1, x1.shape[1], params["conv_w"][2], params["conv_b"][2],
                    params["in_gamma"][2], params["in_beta"][2],
                    in_affine=None, out_dtype=jnp.float32)

    c_last = params["conv_w"][-1].shape[0]
    # TODO(synk): dropout is p=0.0 in the reference config (identity), omitted.
    return jnp.transpose(x2[:, :, :c_last], (0, 2, 1))       # (B, Cout, Tpool)


# ---------------------------------------------------------------------------
if __name__ == "__main__":
    key = jax.random.PRNGKey(0)
    pkey, xkey = jax.random.split(key)
    params = make_sincnet_params(pkey)

    B, T = 2, 800                       # small waveform batch
    waveforms = jax.random.normal(xkey, (B, T), jnp.float32)

    out = jax.jit(sincnet_forward)(params, waveforms)
    out = jax.block_until_ready(out)

    # expected: T=800 -> conv(s=5)=160 -> pool=54 -> 54 -> 18 -> 18 -> 6
    assert out.shape == (B, 60, 6), out.shape
    assert bool(jnp.all(jnp.isfinite(out)))
    print("KERNEL_OK")
</pallas_src>

<mosaic_0001>
module attributes {stable_mosaic.version = 11 : i64} {
  func.func @_sinc_layer0_kernel(%arg0: i32, %arg1: i32, %arg2: memref<1x192x256xbf16, #tpu.memory_space<vmem>>, %arg3: memref<256x128xbf16, #tpu.memory_space<vmem>>, %arg4: memref<1x64x128xbf16, #tpu.memory_space<vmem>>, %arg5: memref<1x1x2x128xf32, #tpu.memory_space<vmem>>, %arg6: memref<192x128xf32, #tpu.memory_space<vmem>>) attributes {dimension_semantics = [#tpu.dimension_semantics<parallel>, #tpu.dimension_semantics<parallel>], iteration_bounds = array<i64: 2, 1>, scalar_prefetch = 0 : i64, scratch_operands = 1 : i64, tpu.core_type = #tpu.core_type<tc>, window_params = [{transform_indices = @transform_0, window_bounds = array<i64: 1, 192, 256>}, {pipeline_mode = #tpu.pipeline_mode<synchronous>, transform_indices = @transform_1, window_bounds = array<i64: 256, 128>}, {transform_indices = @transform_2, window_bounds = array<i64: 1, 64, 128>}, {transform_indices = @transform_3, window_bounds = array<i64: 1, 1, 2, 128>}]} {
    %c0 = arith.constant 0 : index
    %c0_0 = arith.constant 0 : index
    %c0_1 = arith.constant 0 : index
    %0 = vector.load %arg2[%c0, %c0_0, %c0_1] : memref<1x192x256xbf16, #tpu.memory_space<vmem>>, vector<1x192x256xbf16>
    %1 = vector.shape_cast %0 : vector<1x192x256xbf16> to vector<192x256xbf16>
    %c0_2 = arith.constant 0 : index
    %c0_3 = arith.constant 0 : index
    %2 = vector.load %arg3[%c0_2, %c0_3] : memref<256x128xbf16, #tpu.memory_space<vmem>>, vector<256x128xbf16>
    %cst = arith.constant dense<0.000000e+00> : vector<192x128xf32>
    %3 = tpu.matmul %1, %2, %cst {dimension_numbers = #tpu.dot_dimension_numbers<[1], [0], [0], [1], [0, 0, 1, 1], [], []>} : vector<192x256xbf16>, vector<256x128xbf16>, vector<192x128xf32> -> vector<192x128xf32>
    %4 = math.absf %3 : vector<192x128xf32>
    %c0_4 = arith.constant 0 : index
    %c0_5 = arith.constant 0 : index
    %5 = vector.load %arg6[%c0_4, %c0_5] : memref<192x128xf32, #tpu.memory_space<vmem>>, vector<192x128xf32>
    tpu.vector_store %arg6[%c0_4, %c0_5], %4 {strides = array<i32>} : memref<192x128xf32, #tpu.memory_space<vmem>>, vector<192x128xf32>,
    %c0_6 = arith.constant 0 : index
    %c0_7 = arith.constant 0 : index
    %6 = tpu.strided_load %arg6[%c0_6, %c0_7] {strides = array<i32: 3, 1>} : memref<192x128xf32, #tpu.memory_space<vmem>>, vector<64x128xf32>
    %c1 = arith.constant 1 : index
    %c0_8 = arith.constant 0 : index
    %7 = tpu.strided_load %arg6[%c1, %c0_8] {strides = array<i32: 3, 1>} : memref<192x128xf32, #tpu.memory_space<vmem>>, vector<64x128xf32>
    %c2 = arith.constant 2 : index
    %c0_9 = arith.constant 0 : index
    %8 = tpu.strided_load %arg6[%c2, %c0_9] {strides = array<i32: 3, 1>} : memref<192x128xf32, #tpu.memory_space<vmem>>, vector<64x128xf32>
    %9 = arith.maximumf %6, %7 : vector<64x128xf32>
    %10 = arith.maximumf %9, %8 : vector<64x128xf32>
    %11 = arith.truncf %10 : vector<64x128xf32> to vector<64x128xbf16>
    %c0_10 = arith.constant 0 : index
    %c0_11 = arith.constant 0 : index
    %c0_12 = arith.constant 0 : index
    %12 = vector.load %arg4[%c0_10, %c0_11, %c0_12] : memref<1x64x128xbf16, #tpu.memory_space<vmem>>, vector<1x64x128xbf16>
    %13 = vector.shape_cast %12 : vector<1x64x128xbf16> to vector<64x128xbf16>
    %14 = vector.shape_cast %11 : vector<64x128xbf16> to vector<1x64x128xbf16>
    tpu.vector_store %arg4[%c0_10, %c0_11, %c0_12], %14 {strides = array<i32>} : memref<1x64x128xbf16, #tpu.memory_space<vmem>>, vector<1x64x128xbf16>,
    %15 = tpu.iota {dimensions = array<i32: 0>} : vector<64x1xi32>
    %c64_i32 = arith.constant 64 : i32
    %16 = arith.muli %arg1, %c64_i32 : i32
    %17 = vector.broadcast %16 : i32 to vector<64x1xi32>
    %18 = arith.addi %15, %17 : vector<64x1xi32>
    %c54_i32 = arith.constant 54 : i32
    %19 = vector.broadcast %c54_i32 : i32 to vector<64x1xi32>
    %20 = arith.cmpi slt, %18, %19 : vector<64x1xi32>
    %cst_13 = arith.constant 0.000000e+00 : f32
    %21 = vector.shape_cast %20 : vector<64x1xi1> to vector<64x1xi1>
    %22 = vector.broadcast %21 : vector<64x1xi1> to vector<64x128xi1>
    %23 = vector.broadcast %cst_13 : f32 to vector<64x128xf32>
    %24 = arith.select %22, %10, %23 : vector<64x128xi1>, vector<64x128xf32>
    %cst_14 = arith.constant dense<0.000000e+00> : vector<128xf32>
    %25 = vector.multi_reduction <add>, %24, %cst_14 [0] : vector<64x128xf32> to vector<128xf32>
    %26 = vector.shape_cast %25 : vector<128xf32> to vector<1x128xf32>
    %27 = arith.mulf %24, %24 : vector<64x128xf32>
    %cst_15 = arith.constant dense<0.000000e+00> : vector<128xf32>
    %28 = vector.multi_reduction <add>, %27, %cst_15 [0] : vector<64x128xf32> to vector<128xf32>
    %29 = vector.shape_cast %28 : vector<128xf32> to vector<1x128xf32>
    %30 = tpu.concatenate %26, %29 in 0 : vector<1x128xf32>, vector<1x128xf32> -> vector<2x128xf32>
    %c0_16 = arith.constant 0 : index
    %c0_17 = arith.constant 0 : index
    %c0_18 = arith.constant 0 : index
    %c0_19 = arith.constant 0 : index
    %31 = vector.load %arg5[%c0_16, %c0_17, %c0_18, %c0_19] : memref<1x1x2x128xf32, #tpu.memory_space<vmem>>, vector<1x1x2x128xf32>
    %32 = vector.shape_cast %31 : vector<1x1x2x128xf32> to vector<2x128xf32>
    %33 = vector.shape_cast %30 : vector<2x128xf32> to vector<1x1x2x128xf32>
    tpu.vector_store %arg5[%c0_16, %c0_17, %c0_18, %c0_19], %33 {strides = array<i32>} : memref<1x1x2x128xf32, #tpu.memory_space<vmem>>, vector<1x1x2x128xf32>,
    return
  }
  func.func @transform_0(%arg0: i32, %arg1: i32) -> (i32, i32, i32) {
    %c0_i32 = arith.constant 0 : i32
    %c0_i32_0 = arith.constant 0 : i32
    return %arg0, %arg1, %c0_i32 : i32, i32, i32
  }
  func.func @transform_1(%arg0: i32, %arg1: i32) -> (i32, i32) {
    %c0_i32 = arith.constant 0 : i32
    %c0_i32_0 = arith.constant 0 : i32
    %c0_i32_1 = arith.constant 0 : i32
    return %c0_i32, %c0_i32_0 : i32, i32
  }
  func.func @transform_2(%arg0: i32, %arg1: i32) -> (i32, i32, i32) {
    %c0_i32 = arith.constant 0 : i32
    %c0_i32_0 = arith.constant 0 : i32
    return %arg0, %arg1, %c0_i32 : i32, i32, i32
  }
  func.func @transform_3(%arg0: i32, %arg1: i32) -> (i32, i32, i32, i32) {
    %c0_i32 = arith.constant 0 : i32
    %c0_i32_0 = arith.constant 0 : i32
    %c0_i32_1 = arith.constant 0 : i32
    return %arg0, %arg1, %c0_i32, %c0_i32_0 : i32, i32, i32, i32
  }
}

module attributes {stable_mosaic.version = 11 : i64} {
  func.func @_conv_block_kernel(%arg0: i32, %arg1: memref<1x64x128xbf16, #tpu.memory_space<vmem>>, %arg2: memref<5x128x128xbf16, #tpu.memory_space<vmem>>, %arg3: memref<8x128xf32, #tpu.memory_space<vmem>>, %arg4: memref<1x2x128xf32, #tpu.memory_space<vmem>>, %arg5: memref<1x18x128xbf16, #tpu.memory_space<vmem>>, %arg6: memref<55x128xf32, #tpu.memory_space<vmem>>) attributes {dimension_semantics = [#tpu.dimension_semantics<parallel>], iteration_bounds = array<i64: 2>, scalar_prefetch = 0 : i64, scratch_operands = 1 : i64, tpu.core_type = #tpu.core_type<tc>, window_params = [{transform_indices = @transform_0, window_bounds = array<i64: 1, 64, 128>}, {pipeline_mode = #tpu.pipeline_mode<synchronous>, transform_indices = @transform_1, window_bounds = array<i64: 5, 128, 128>}, {pipeline_mode = #tpu.pipeline_mode<synchronous>, transform_indices = @transform_2, window_bounds = array<i64: 8, 128>}, {transform_indices = @transform_3, window_bounds = array<i64: 1, 2, 128>}, {transform_indices = @transform_4, window_bounds = array<i64: 1, 18, 128>}]} {
    %cst = arith.constant -3.000000e+38 : f32
    %0 = vector.broadcast %cst : f32 to vector<1x128xf32>
    %c0 = arith.constant 0 : index
    %c0_0 = arith.constant 0 : index
    %1 = vector.load %arg6[%c0, %c0_0] : memref<55x128xf32, #tpu.memory_space<vmem>>, vector<1x128xf32>
    tpu.vector_store %arg6[%c0, %c0_0], %0 {strides = array<i32>} : memref<55x128xf32, #tpu.memory_space<vmem>>, vector<1x128xf32>,
    %cst_1 = arith.constant 0.000000e+00 : f32
    %2 = vector.broadcast %cst_1 : f32 to vector<54x128xf32>
    %c1 = arith.constant 1 : index
    %c0_2 = arith.constant 0 : index
    %3 = vector.load %arg6[%c1, %c0_2] : memref<55x128xf32, #tpu.memory_space<vmem>>, vector<54x128xf32>
    tpu.vector_store %arg6[%c1, %c0_2], %2 {strides = array<i32>} : memref<55x128xf32, #tpu.memory_space<vmem>>, vector<54x128xf32>,
    %c0_3 = arith.constant 0 : index
    %c0_4 = arith.constant 0 : index
    %c0_5 = arith.constant 0 : index
    %4 = vector.load %arg4[%c0_3, %c0_4, %c0_5] : memref<1x2x128xf32, #tpu.memory_space<vmem>>, vector<1x1x128xf32>
    %5 = vector.shape_cast %4 : vector<1x1x128xf32> to vector<1x128xf32>
    %c0_6 = arith.constant 0 : index
    %c1_7 = arith.constant 1 : index
    %c0_8 = arith.constant 0 : index
    %6 = vector.load %arg4[%c0_6, %c1_7, %c0_8] : memref<1x2x128xf32, #tpu.memory_space<vmem>>, vector<1x1x128xf32>
    %7 = vector.shape_cast %6 : vector<1x1x128xf32> to vector<1x128xf32>
    %c0_9 = arith.constant 0 : index
    %c0_10 = arith.constant 0 : index
    %c0_11 = arith.constant 0 : index
    %8 = vector.load %arg1[%c0_9, %c0_10, %c0_11] : memref<1x64x128xbf16, #tpu.memory_space<vmem>>, vector<1x52x128xbf16>
    %9 = vector.shape_cast %8 : vector<1x52x128xbf16> to vector<52x128xbf16>
    %10 = arith.extf %9 : vector<52x128xbf16> to vector<52x128xf32>
    %11 = vector.broadcast %5 : vector<1x128xf32> to vector<52x128xf32>
    %12 = arith.mulf %10, %11 : vector<52x128xf32>
    %13 = vector.broadcast %7 : vector<1x128xf32> to vector<52x128xf32>
    %14 = arith.addf %12, %13 : vector<52x128xf32>
    %cst_12 = arith.constant 0.000000e+00 : f32
    %15 = vector.broadcast %cst_12 : f32 to vector<52x128xf32>
    %16 = arith.cmpf oge, %14, %15 : vector<52x128xf32>
    %cst_13 = arith.constant 2.000000e-01 : f32
    %17 = vector.broadcast %cst_13 : f32 to vector<52x128xf32>
    %18 = arith.mulf %17, %14 : vector<52x128xf32>
    %19 = arith.select %16, %14, %18 : vector<52x128xi1>, vector<52x128xf32>
    %20 = arith.truncf %19 : vector<52x128xf32> to vector<52x128xbf16>
    %c3 = arith.constant 3 : index
    %c0_14 = arith.constant 0 : index
    %21 = vector.load %arg6[%c3, %c0_14] : memref<55x128xf32, #tpu.memory_space<vmem>>, vector<52x128xf32>
    %c0_15 = arith.constant 0 : index
    %c0_16 = arith.constant 0 : index
    %c0_17 = arith.constant 0 : index
    %22 = vector.load %arg2[%c0_15, %c0_16, %c0_17] : memref<5x128x128xbf16, #tpu.memory_space<vmem>>, vector<1x128x128xbf16>
    %23 = vector.shape_cast %22 : vector<1x128x128xbf16> to vector<128x128xbf16>
    %cst_18 = arith.constant dense<0.000000e+00> : vector<52x128xf32>
    %24 = tpu.matmul %20, %23, %cst_18 {dimension_numbers = #tpu.dot_dimension_numbers<[1], [0], [0], [1], [0, 0, 1, 1], [], []>} : vector<52x128xbf16>, vector<128x128xbf16>, vector<52x128xf32> -> vector<52x128xf32>
    %25 = arith.addf %21, %24 : vector<52x128xf32>
    %c3_19 = arith.constant 3 : index
    %c0_20 = arith.constant 0 : index
    %26 = vector.load %arg6[%c3_19, %c0_20] : memref<55x128xf32, #tpu.memory_space<vmem>>, vector<52x128xf32>
    tpu.vector_store %arg6[%c3_19, %c0_20], %25 {strides = array<i32>} : memref<55x128xf32, #tpu.memory_space<vmem>>, vector<52x128xf32>,
    %c0_21 = arith.constant 0 : index
    %c0_22 = arith.constant 0 : index
    %c0_23 = arith.constant 0 : index
    %27 = vector.load %arg1[%c0_21, %c0_22, %c0_23] : memref<1x64x128xbf16, #tpu.memory_space<vmem>>, vector<1x53x128xbf16>
    %28 = vector.shape_cast %27 : vector<1x53x128xbf16> to vector<53x128xbf16>
    %29 = arith.extf %28 : vector<53x128xbf16> to vector<53x128xf32>
    %30 = vector.broadcast %5 : vector<1x128xf32> to vector<53x128xf32>
    %31 = arith.mulf %29, %30 : vector<53x128xf32>
    %32 = vector.broadcast %7 : vector<1x128xf32> to vector<53x128xf32>
    %33 = arith.addf %31, %32 : vector<53x128xf32>
    %cst_24 = arith.constant 0.000000e+00 : f32
    %34 = vector.broadcast %cst_24 : f32 to vector<53x128xf32>
    %35 = arith.cmpf oge, %33, %34 : vector<53x128xf32>
    %cst_25 = arith.constant 2.000000e-01 : f32
    %36 = vector.broadcast %cst_25 : f32 to vector<53x128xf32>
    %37 = arith.mulf %36, %33 : vector<53x128xf32>
    %38 = arith.select %35, %33, %37 : vector<53x128xi1>, vector<53x128xf32>
    %39 = arith.truncf %38 : vector<53x128xf32> to vector<53x128xbf16>
    %c2 = arith.constant 2 : index
    %c0_26 = arith.constant 0 : index
    %40 = vector.load %arg6[%c2, %c0_26] : memref<55x128xf32, #tpu.memory_space<vmem>>, vector<53x128xf32>
    %c1_27 = arith.constant 1 : index
    %c0_28 = arith.constant 0 : index
    %c0_29 = arith.constant 0 : index
    %41 = vector.load %arg2[%c1_27, %c0_28, %c0_29] : memref<5x128x128xbf16, #tpu.memory_space<vmem>>, vector<1x128x128xbf16>
    %42 = vector.shape_cast %41 : vector<1x128x128xbf16> to vector<128x128xbf16>
    %cst_30 = arith.constant dense<0.000000e+00> : vector<53x128xf32>
    %43 = tpu.matmul %39, %42, %cst_30 {dimension_numbers = #tpu.dot_dimension_numbers<[1], [0], [0], [1], [0, 0, 1, 1], [], []>} : vector<53x128xbf16>, vector<128x128xbf16>, vector<53x128xf32> -> vector<53x128xf32>
    %44 = arith.addf %40, %43 : vector<53x128xf32>
    %c2_31 = arith.constant 2 : index
    %c0_32 = arith.constant 0 : index
    %45 = vector.load %arg6[%c2_31, %c0_32] : memref<55x128xf32, #tpu.memory_space<vmem>>, vector<53x128xf32>
    tpu.vector_store %arg6[%c2_31, %c0_32], %44 {strides = array<i32>} : memref<55x128xf32, #tpu.memory_space<vmem>>, vector<53x128xf32>,
    %c0_33 = arith.constant 0 : index
    %c0_34 = arith.constant 0 : index
    %c0_35 = arith.constant 0 : index
    %46 = vector.load %arg1[%c0_33, %c0_34, %c0_35] : memref<1x64x128xbf16, #tpu.memory_space<vmem>>, vector<1x54x128xbf16>
    %47 = vector.shape_cast %46 : vector<1x54x128xbf16> to vector<54x128xbf16>
    %48 = arith.extf %47 : vector<54x128xbf16> to vector<54x128xf32>
    %49 = vector.broadcast %5 : vector<1x128xf32> to vector<54x128xf32>
    %50 = arith.mulf %48, %49 : vector<54x128xf32>
    %51 = vector.broadcast %7 : vector<1x128xf32> to vector<54x128xf32>
    %52 = arith.addf %50, %51 : vector<54x128xf32>
    %cst_36 = arith.constant 0.000000e+00 : f32
    %53 = vector.broadcast %cst_36 : f32 to vector<54x128xf32>
    %54 = arith.cmpf oge, %52, %53 : vector<54x128xf32>
    %cst_37 = arith.constant 2.000000e-01 : f32
    %55 = vector.broadcast %cst_37 : f32 to vector<54x128xf32>
    %56 = arith.mulf %55, %52 : vector<54x128xf32>
    %57 = arith.select %54, %52, %56 : vector<54x128xi1>, vector<54x128xf32>
    %58 = arith.truncf %57 : vector<54x128xf32> to vector<54x128xbf16>
    %c1_38 = arith.constant 1 : index
    %c0_39 = arith.constant 0 : index
    %59 = vector.load %arg6[%c1_38, %c0_39] : memref<55x128xf32, #tpu.memory_space<vmem>>, vector<54x128xf32>
    %c2_40 = arith.constant 2 : index
    %c0_41 = arith.constant 0 : index
    %c0_42 = arith.constant 0 : index
    %60 = vector.load %arg2[%c2_40, %c0_41, %c0_42] : memref<5x128x128xbf16, #tpu.memory_space<vmem>>, vector<1x128x128xbf16>
    %61 = vector.shape_cast %60 : vector<1x128x128xbf16> to vector<128x128xbf16>
    %cst_43 = arith.constant dense<0.000000e+00> : vector<54x128xf32>
    %62 = tpu.matmul %58, %61, %cst_43 {dimension_numbers = #tpu.dot_dimension_numbers<[1], [0], [0], [1], [0, 0, 1, 1], [], []>} : vector<54x128xbf16>, vector<128x128xbf16>, vector<54x128xf32> -> vector<54x128xf32>
    %63 = arith.addf %59, %62 : vector<54x128xf32>
    %c1_44 = arith.constant 1 : index
    %c0_45 = arith.constant 0 : index
    %64 = vector.load %arg6[%c1_44, %c0_45] : memref<55x128xf32, #tpu.memory_space<vmem>>, vector<54x128xf32>
    tpu.vector_store %arg6[%c1_44, %c0_45], %63 {strides = array<i32>} : memref<55x128xf32, #tpu.memory_space<vmem>>, vector<54x128xf32>,
    %c0_46 = arith.constant 0 : index
    %c1_47 = arith.constant 1 : index
    %c0_48 = arith.constant 0 : index
    %65 = vector.load %arg1[%c0_46, %c1_47, %c0_48] : memref<1x64x128xbf16, #tpu.memory_space<vmem>>, vector<1x53x128xbf16>
    %66 = vector.shape_cast %65 : vector<1x53x128xbf16> to vector<53x128xbf16>
    %67 = arith.extf %66 : vector<53x128xbf16> to vector<53x128xf32>
    %68 = vector.broadcast %5 : vector<1x128xf32> to vector<53x128xf32>
    %69 = arith.mulf %67, %68 : vector<53x128xf32>
    %70 = vector.broadcast %7 : vector<1x128xf32> to vector<53x128xf32>
    %71 = arith.addf %69, %70 : vector<53x128xf32>
    %cst_49 = arith.constant 0.000000e+00 : f32
    %72 = vector.broadcast %cst_49 : f32 to vector<53x128xf32>
    %73 = arith.cmpf oge, %71, %72 : vector<53x128xf32>
    %cst_50 = arith.constant 2.000000e-01 : f32
    %74 = vector.broadcast %cst_50 : f32 to vector<53x128xf32>
    %75 = arith.mulf %74, %71 : vector<53x128xf32>
    %76 = arith.select %73, %71, %75 : vector<53x128xi1>, vector<53x128xf32>
    %77 = arith.truncf %76 : vector<53x128xf32> to vector<53x128xbf16>
    %c1_51 = arith.constant 1 : index
    %c0_52 = arith.constant 0 : index
    %78 = vector.load %arg6[%c1_51, %c0_52] : memref<55x128xf32, #tpu.memory_space<vmem>>, vector<53x128xf32>
    %c3_53 = arith.constant 3 : index
    %c0_54 = arith.constant 0 : index
    %c0_55 = arith.constant 0 : index
    %79 = vector.load %arg2[%c3_53, %c0_54, %c0_55] : memref<5x128x128xbf16, #tpu.memory_space<vmem>>, vector<1x128x128xbf16>
    %80 = vector.shape_cast %79 : vector<1x128x128xbf16> to vector<128x128xbf16>
    %cst_56 = arith.constant dense<0.000000e+00> : vector<53x128xf32>
    %81 = tpu.matmul %77, %80, %cst_56 {dimension_numbers = #tpu.dot_dimension_numbers<[1], [0], [0], [1], [0, 0, 1, 1], [], []>} : vector<53x128xbf16>, vector<128x128xbf16>, vector<53x128xf32> -> vector<53x128xf32>
    %82 = arith.addf %78, %81 : vector<53x128xf32>
    %c1_57 = arith.constant 1 : index
    %c0_58 = arith.constant 0 : index
    %83 = vector.load %arg6[%c1_57, %c0_58] : memref<55x128xf32, #tpu.memory_space<vmem>>, vector<53x128xf32>
    tpu.vector_store %arg6[%c1_57, %c0_58], %82 {strides = array<i32>} : memref<55x128xf32, #tpu.memory_space<vmem>>, vector<53x128xf32>,
    %c0_59 = arith.constant 0 : index
    %c2_60 = arith.constant 2 : index
    %c0_61 = arith.constant 0 : index
    %84 = vector.load %arg1[%c0_59, %c2_60, %c0_61] : memref<1x64x128xbf16, #tpu.memory_space<vmem>>, vector<1x52x128xbf16>
    %85 = vector.shape_cast %84 : vector<1x52x128xbf16> to vector<52x128xbf16>
    %86 = arith.extf %85 : vector<52x128xbf16> to vector<52x128xf32>
    %87 = vector.broadcast %5 : vector<1x128xf32> to vector<52x128xf32>
    %88 = arith.mulf %86, %87 : vector<52x128xf32>
    %89 = vector.broadcast %7 : vector<1x128xf32> to vector<52x128xf32>
    %90 = arith.addf %88, %89 : vector<52x128xf32>
    %cst_62 = arith.constant 0.000000e+00 : f32
    %91 = vector.broadcast %cst_62 : f32 to vector<52x128xf32>
    %92 = arith.cmpf oge, %90, %91 : vector<52x128xf32>
    %cst_63 = arith.constant 2.000000e-01 : f32
    %93 = vector.broadcast %cst_63 : f32 to vector<52x128xf32>
    %94 = arith.mulf %93, %90 : vector<52x128xf32>
    %95 = arith.select %92, %90, %94 : vector<52x128xi1>, vector<52x128xf32>
    %96 = arith.truncf %95 : vector<52x128xf32> to vector<52x128xbf16>
    %c1_64 = arith.constant 1 : index
    %c0_65 = arith.constant 0 : index
    %97 = vector.load %arg6[%c1_64, %c0_65] : memref<55x128xf32, #tpu.memory_space<vmem>>, vector<52x128xf32>
    %c4 = arith.constant 4 : index
    %c0_66 = arith.constant 0 : index
    %c0_67 = arith.constant 0 : index
    %98 = vector.load %arg2[%c4, %c0_66, %c0_67] : memref<5x128x128xbf16, #tpu.memory_space<vmem>>, vector<1x128x128xbf16>
    %99 = vector.shape_cast %98 : vector<1x128x128xbf16> to vector<128x128xbf16>
    %cst_68 = arith.constant dense<0.000000e+00> : vector<52x128xf32>
    %100 = tpu.matmul %96, %99, %cst_68 {dimension_numbers = #tpu.dot_dimension_numbers<[1], [0], [0], [1], [0, 0, 1, 1], [], []>} : vector<52x128xbf16>, vector<128x128xbf16>, vector<52x128xf32> -> vector<52x128xf32>
    %101 = arith.addf %97, %100 : vector<52x128xf32>
    %c1_69 = arith.constant 1 : index
    %c0_70 = arith.constant 0 : index
    %102 = vector.load %arg6[%c1_69, %c0_70] : memref<55x128xf32, #tpu.memory_space<vmem>>, vector<52x128xf32>
    tpu.vector_store %arg6[%c1_69, %c0_70], %101 {strides = array<i32>} : memref<55x128xf32, #tpu.memory_space<vmem>>, vector<52x128xf32>,
    %c0_71 = arith.constant 0 : index
    %c0_72 = arith.constant 0 : index
    %103 = tpu.strided_load %arg6[%c0_71, %c0_72] {strides = array<i32: 3, 1>} : memref<55x128xf32, #tpu.memory_space<vmem>>, vector<18x128xf32>
    %c1_73 = arith.constant 1 : index
    %c0_74 = arith.constant 0 : index
    %104 = tpu.strided_load %arg6[%c1_73, %c0_74] {strides = array<i32: 3, 1>} : memref<55x128xf32, #tpu.memory_space<vmem>>, vector<18x128xf32>
    %c2_75 = arith.constant 2 : index
    %c0_76 = arith.constant 0 : index
    %105 = tpu.strided_load %arg6[%c2_75, %c0_76] {strides = array<i32: 3, 1>} : memref<55x128xf32, #tpu.memory_space<vmem>>, vector<18x128xf32>
    %106 = arith.maximumf %103, %104 : vector<18x128xf32>
    %107 = arith.maximumf %106, %105 : vector<18x128xf32>
    %c0_77 = arith.constant 0 : index
    %c0_78 = arith.constant 0 : index
    %108 = vector.load %arg3[%c0_77, %c0_78] : memref<8x128xf32, #tpu.memory_space<vmem>>, vector<1x128xf32>
    %109 = vector.broadcast %108 : vector<1x128xf32> to vector<18x128xf32>
    %110 = arith.addf %107, %109 : vector<18x128xf32>
    %cst_79 = arith.constant dense<0.000000e+00> : vector<128xf32>
    %111 = vector.multi_reduction <add>, %110, %cst_79 [0] : vector<18x128xf32> to vector<128xf32>
    %112 = vector.shape_cast %111 : vector<128xf32> to vector<1x128xf32>
    %cst_80 = arith.constant 1.800000e+01 : f32
    %113 = vector.broadcast %cst_80 : f32 to vector<1x128xf32>
    %114 = arith.divf %112, %113 : vector<1x128xf32>
    %115 = vector.broadcast %114 : vector<1x128xf32> to vector<18x128xf32>
    %116 = arith.subf %110, %115 : vector<18x128xf32>
    %117 = arith.mulf %116, %116 : vector<18x128xf32>
    %cst_81 = arith.constant dense<0.000000e+00> : vector<128xf32>
    %118 = vector.multi_reduction <add>, %117, %cst_81 [0] : vector<18x128xf32> to vector<128xf32>
    %119 = vector.shape_cast %118 : vector<128xf32> to vector<1x128xf32>
    %cst_82 = arith.constant 1.800000e+01 : f32
    %120 = vector.broadcast %cst_82 : f32 to vector<1x128xf32>
    %121 = arith.divf %119, %120 : vector<1x128xf32>
    %122 = vector.broadcast %114 : vector<1x128xf32> to vector<18x128xf32>
    %123 = arith.subf %110, %122 : vector<18x128xf32>
    %cst_83 = arith.constant 9.99999974E-6 : f32
    %124 = vector.broadcast %cst_83 : f32 to vector<1x128xf32>
    %125 = arith.addf %121, %124 : vector<1x128xf32>
    %126 = math.rsqrt %125 : vector<1x128xf32>
    %127 = vector.broadcast %126 : vector<1x128xf32> to vector<18x128xf32>
    %128 = arith.mulf %123, %127 : vector<18x128xf32>
    %c1_84 = arith.constant 1 : index
    %c0_85 = arith.constant 0 : index
    %129 = vector.load %arg3[%c1_84, %c0_85] : memref<8x128xf32, #tpu.memory_space<vmem>>, vector<1x128xf32>
    %130 = vector.broadcast %129 : vector<1x128xf32> to vector<18x128xf32>
    %131 = arith.mulf %128, %130 : vector<18x128xf32>
    %c2_86 = arith.constant 2 : index
    %c0_87 = arith.constant 0 : index
    %132 = vector.load %arg3[%c2_86, %c0_87] : memref<8x128xf32, #tpu.memory_space<vmem>>, vector<1x128xf32>
    %133 = vector.broadcast %132 : vector<1x128xf32> to vector<18x128xf32>
    %134 = arith.addf %131, %133 : vector<18x128xf32>
    %cst_88 = arith.constant 0.000000e+00 : f32
    %135 = vector.broadcast %cst_88 : f32 to vector<18x128xf32>
    %136 = arith.cmpf oge, %134, %135 : vector<18x128xf32>
    %cst_89 = arith.constant 2.000000e-01 : f32
    %137 = vector.broadcast %cst_89 : f32 to vector<18x128xf32>
    %138 = arith.mulf %137, %134 : vector<18x128xf32>
    %139 = arith.select %136, %134, %138 : vector<18x128xi1>, vector<18x128xf32>
    %140 = arith.truncf %139 : vector<18x128xf32> to vector<18x128xbf16>
    %c0_90 = arith.constant 0 : index
    %c0_91 = arith.constant 0 : index
    %c0_92 = arith.constant 0 : index
    %141 = vector.load %arg5[%c0_90, %c0_91, %c0_92] : memref<1x18x128xbf16, #tpu.memory_space<vmem>>, vector<1x18x128xbf16>
    %142 = vector.shape_cast %141 : vector<1x18x128xbf16> to vector<18x128xbf16>
    %143 = vector.shape_cast %140 : vector<18x128xbf16> to vector<1x18x128xbf16>
    tpu.vector_store %arg5[%c0_90, %c0_91, %c0_92], %143 {strides = array<i32>} : memref<1x18x128xbf16, #tpu.memory_space<vmem>>, vector<1x18x128xbf16>,
    return
  }
  func.func @transform_0(%arg0: i32) -> (i32, i32, i32) {
    %c0_i32 = arith.constant 0 : i32
    %c0_i32_0 = arith.constant 0 : i32
    %c0_i32_1 = arith.constant 0 : i32
    return %arg0, %c0_i32, %c0_i32_0 : i32, i32, i32
  }
  func.func @transform_1(%arg0: i32) -> (i32, i32, i32) {
    %c0_i32 = arith.constant 0 : i32
    %c0_i32_0 = arith.constant 0 : i32
    %c0_i32_1 = arith.constant 0 : i32
    %c0_i32_2 = arith.constant 0 : i32
    return %c0_i32, %c0_i32_0, %c0_i32_1 : i32, i32, i32
  }
  func.func @transform_2(%arg0: i32) -> (i32, i32) {
    %c0_i32 = arith.constant 0 : i32
    %c0_i32_0 = arith.constant 0 : i32
    %c0_i32_1 = arith.constant 0 : i32
    return %c0_i32, %c0_i32_0 : i32, i32
  }
  func.func @transform_3(%arg0: i32) -> (i32, i32, i32) {
    %c0_i32 = arith.constant 0 : i32
    %c0_i32_0 = arith.constant 0 : i32
    %c0_i32_1 = arith.constant 0 : i32
    return %arg0, %c0_i32, %c0_i32_0 : i32, i32, i32
  }
  func.func @transform_4(%arg0: i32) -> (i32, i32, i32) {
    %c0_i32 = arith.constant 0 : i32
    %c0_i32_0 = arith.constant 0 : i32
    %c0_i32_1 = arith.constant 0 : i32
    return %arg0, %c0_i32, %c0_i32_0 : i32, i32, i32
  }
}

module attributes {stable_mosaic.version = 11 : i64} {
  func.func @_conv_block_kernel(%arg0: i32, %arg1: memref<1x18x128xbf16, #tpu.memory_space<vmem>>, %arg2: memref<5x128x128xbf16, #tpu.memory_space<vmem>>, %arg3: memref<8x128xf32, #tpu.memory_space<vmem>>, %arg4: memref<1x2x128xf32, #tpu.memory_space<vmem>>, %arg5: memref<1x6x128xf32, #tpu.memory_space<vmem>>, %arg6: memref<19x128xf32, #tpu.memory_space<vmem>>) attributes {dimension_semantics = [#tpu.dimension_semantics<parallel>], iteration_bounds = array<i64: 2>, scalar_prefetch = 0 : i64, scratch_operands = 1 : i64, tpu.core_type = #tpu.core_type<tc>, window_params = [{transform_indices = @transform_0, window_bounds = array<i64: 1, 18, 128>}, {pipeline_mode = #tpu.pipeline_mode<synchronous>, transform_indices = @transform_1, window_bounds = array<i64: 5, 128, 128>}, {pipeline_mode = #tpu.pipeline_mode<synchronous>, transform_indices = @transform_2, window_bounds = array<i64: 8, 128>}, {transform_indices = @transform_3, window_bounds = array<i64: 1, 2, 128>}, {transform_indices = @transform_4, window_bounds = array<i64: 1, 6, 128>}]} {
    %cst = arith.constant -3.000000e+38 : f32
    %0 = vector.broadcast %cst : f32 to vector<1x128xf32>
    %c0 = arith.constant 0 : index
    %c0_0 = arith.constant 0 : index
    %1 = vector.load %arg6[%c0, %c0_0] : memref<19x128xf32, #tpu.memory_space<vmem>>, vector<1x128xf32>
    tpu.vector_store %arg6[%c0, %c0_0], %0 {strides = array<i32>} : memref<19x128xf32, #tpu.memory_space<vmem>>, vector<1x128xf32>,
    %cst_1 = arith.constant 0.000000e+00 : f32
    %2 = vector.broadcast %cst_1 : f32 to vector<18x128xf32>
    %c1 = arith.constant 1 : index
    %c0_2 = arith.constant 0 : index
    %3 = vector.load %arg6[%c1, %c0_2] : memref<19x128xf32, #tpu.memory_space<vmem>>, vector<18x128xf32>
    tpu.vector_store %arg6[%c1, %c0_2], %2 {strides = array<i32>} : memref<19x128xf32, #tpu.memory_space<vmem>>, vector<18x128xf32>,
    %c0_3 = arith.constant 0 : index
    %c0_4 = arith.constant 0 : index
    %c0_5 = arith.constant 0 : index
    %4 = vector.load %arg1[%c0_3, %c0_4, %c0_5] : memref<1x18x128xbf16, #tpu.memory_space<vmem>>, vector<1x16x128xbf16>
    %5 = vector.shape_cast %4 : vector<1x16x128xbf16> to vector<16x128xbf16>
    %c3 = arith.constant 3 : index
    %c0_6 = arith.constant 0 : index
    %6 = vector.load %arg6[%c3, %c0_6] : memref<19x128xf32, #tpu.memory_space<vmem>>, vector<16x128xf32>
    %c0_7 = arith.constant 0 : index
    %c0_8 = arith.constant 0 : index
    %c0_9 = arith.constant 0 : index
    %7 = vector.load %arg2[%c0_7, %c0_8, %c0_9] : memref<5x128x128xbf16, #tpu.memory_space<vmem>>, vector<1x128x128xbf16>
    %8 = vector.shape_cast %7 : vector<1x128x128xbf16> to vector<128x128xbf16>
    %cst_10 = arith.constant dense<0.000000e+00> : vector<16x128xf32>
    %9 = tpu.matmul %5, %8, %cst_10 {dimension_numbers = #tpu.dot_dimension_numbers<[1], [0], [0], [1], [0, 0, 1, 1], [], []>} : vector<16x128xbf16>, vector<128x128xbf16>, vector<16x128xf32> -> vector<16x128xf32>
    %10 = arith.addf %6, %9 : vector<16x128xf32>
    %c3_11 = arith.constant 3 : index
    %c0_12 = arith.constant 0 : index
    %11 = vector.load %arg6[%c3_11, %c0_12] : memref<19x128xf32, #tpu.memory_space<vmem>>, vector<16x128xf32>
    tpu.vector_store %arg6[%c3_11, %c0_12], %10 {strides = array<i32>} : memref<19x128xf32, #tpu.memory_space<vmem>>, vector<16x128xf32>,
    %c0_13 = arith.constant 0 : index
    %c0_14 = arith.constant 0 : index
    %c0_15 = arith.constant 0 : index
    %12 = vector.load %arg1[%c0_13, %c0_14, %c0_15] : memref<1x18x128xbf16, #tpu.memory_space<vmem>>, vector<1x17x128xbf16>
    %13 = vector.shape_cast %12 : vector<1x17x128xbf16> to vector<17x128xbf16>
    %c2 = arith.constant 2 : index
    %c0_16 = arith.constant 0 : index
    %14 = vector.load %arg6[%c2, %c0_16] : memref<19x128xf32, #tpu.memory_space<vmem>>, vector<17x128xf32>
    %c1_17 = arith.constant 1 : index
    %c0_18 = arith.constant 0 : index
    %c0_19 = arith.constant 0 : index
    %15 = vector.load %arg2[%c1_17, %c0_18, %c0_19] : memref<5x128x128xbf16, #tpu.memory_space<vmem>>, vector<1x128x128xbf16>
    %16 = vector.shape_cast %15 : vector<1x128x128xbf16> to vector<128x128xbf16>
    %cst_20 = arith.constant dense<0.000000e+00> : vector<17x128xf32>
    %17 = tpu.matmul %13, %16, %cst_20 {dimension_numbers = #tpu.dot_dimension_numbers<[1], [0], [0], [1], [0, 0, 1, 1], [], []>} : vector<17x128xbf16>, vector<128x128xbf16>, vector<17x128xf32> -> vector<17x128xf32>
    %18 = arith.addf %14, %17 : vector<17x128xf32>
    %c2_21 = arith.constant 2 : index
    %c0_22 = arith.constant 0 : index
    %19 = vector.load %arg6[%c2_21, %c0_22] : memref<19x128xf32, #tpu.memory_space<vmem>>, vector<17x128xf32>
    tpu.vector_store %arg6[%c2_21, %c0_22], %18 {strides = array<i32>} : memref<19x128xf32, #tpu.memory_space<vmem>>, vector<17x128xf32>,
    %c0_23 = arith.constant 0 : index
    %c0_24 = arith.constant 0 : index
    %c0_25 = arith.constant 0 : index
    %20 = vector.load %arg1[%c0_23, %c0_24, %c0_25] : memref<1x18x128xbf16, #tpu.memory_space<vmem>>, vector<1x18x128xbf16>
    %21 = vector.shape_cast %20 : vector<1x18x128xbf16> to vector<18x128xbf16>
    %c1_26 = arith.constant 1 : index
    %c0_27 = arith.constant 0 : index
    %22 = vector.load %arg6[%c1_26, %c0_27] : memref<19x128xf32, #tpu.memory_space<vmem>>, vector<18x128xf32>
    %c2_28 = arith.constant 2 : index
    %c0_29 = arith.constant 0 : index
    %c0_30 = arith.constant 0 : index
    %23 = vector.load %arg2[%c2_28, %c0_29, %c0_30] : memref<5x128x128xbf16, #tpu.memory_space<vmem>>, vector<1x128x128xbf16>
    %24 = vector.shape_cast %23 : vector<1x128x128xbf16> to vector<128x128xbf16>
    %cst_31 = arith.constant dense<0.000000e+00> : vector<18x128xf32>
    %25 = tpu.matmul %21, %24, %cst_31 {dimension_numbers = #tpu.dot_dimension_numbers<[1], [0], [0], [1], [0, 0, 1, 1], [], []>} : vector<18x128xbf16>, vector<128x128xbf16>, vector<18x128xf32> -> vector<18x128xf32>
    %26 = arith.addf %22, %25 : vector<18x128xf32>
    %c1_32 = arith.constant 1 : index
    %c0_33 = arith.constant 0 : index
    %27 = vector.load %arg6[%c1_32, %c0_33] : memref<19x128xf32, #tpu.memory_space<vmem>>, vector<18x128xf32>
    tpu.vector_store %arg6[%c1_32, %c0_33], %26 {strides = array<i32>} : memref<19x128xf32, #tpu.memory_space<vmem>>, vector<18x128xf32>,
    %c0_34 = arith.constant 0 : index
    %c1_35 = arith.constant 1 : index
    %c0_36 = arith.constant 0 : index
    %28 = vector.load %arg1[%c0_34, %c1_35, %c0_36] : memref<1x18x128xbf16, #tpu.memory_space<vmem>>, vector<1x17x128xbf16>
    %29 = vector.shape_cast %28 : vector<1x17x128xbf16> to vector<17x128xbf16>
    %c1_37 = arith.constant 1 : index
    %c0_38 = arith.constant 0 : index
    %30 = vector.load %arg6[%c1_37, %c0_38] : memref<19x128xf32, #tpu.memory_space<vmem>>, vector<17x128xf32>
    %c3_39 = arith.constant 3 : index
    %c0_40 = arith.constant 0 : index
    %c0_41 = arith.constant 0 : index
    %31 = vector.load %arg2[%c3_39, %c0_40, %c0_41] : memref<5x128x128xbf16, #tpu.memory_space<vmem>>, vector<1x128x128xbf16>
    %32 = vector.shape_cast %31 : vector<1x128x128xbf16> to vector<128x128xbf16>
    %cst_42 = arith.constant dense<0.000000e+00> : vector<17x128xf32>
    %33 = tpu.matmul %29, %32, %cst_42 {dimension_numbers = #tpu.dot_dimension_numbers<[1], [0], [0], [1], [0, 0, 1, 1], [], []>} : vector<17x128xbf16>, vector<128x128xbf16>, vector<17x128xf32> -> vector<17x128xf32>
    %34 = arith.addf %30, %33 : vector<17x128xf32>
    %c1_43 = arith.constant 1 : index
    %c0_44 = arith.constant 0 : index
    %35 = vector.load %arg6[%c1_43, %c0_44] : memref<19x128xf32, #tpu.memory_space<vmem>>, vector<17x128xf32>
    tpu.vector_store %arg6[%c1_43, %c0_44], %34 {strides = array<i32>} : memref<19x128xf32, #tpu.memory_space<vmem>>, vector<17x128xf32>,
    %c0_45 = arith.constant 0 : index
    %c2_46 = arith.constant 2 : index
    %c0_47 = arith.constant 0 : index
    %36 = vector.load %arg1[%c0_45, %c2_46, %c0_47] : memref<1x18x128xbf16, #tpu.memory_space<vmem>>, vector<1x16x128xbf16>
    %37 = vector.shape_cast %36 : vector<1x16x128xbf16> to vector<16x128xbf16>
    %c1_48 = arith.constant 1 : index
    %c0_49 = arith.constant 0 : index
    %38 = vector.load %arg6[%c1_48, %c0_49] : memref<19x128xf32, #tpu.memory_space<vmem>>, vector<16x128xf32>
    %c4 = arith.constant 4 : index
    %c0_50 = arith.constant 0 : index
    %c0_51 = arith.constant 0 : index
    %39 = vector.load %arg2[%c4, %c0_50, %c0_51] : memref<5x128x128xbf16, #tpu.memory_space<vmem>>, vector<1x128x128xbf16>
    %40 = vector.shape_cast %39 : vector<1x128x128xbf16> to vector<128x128xbf16>
    %cst_52 = arith.constant dense<0.000000e+00> : vector<16x128xf32>
    %41 = tpu.matmul %37, %40, %cst_52 {dimension_numbers = #tpu.dot_dimension_numbers<[1], [0], [0], [1], [0, 0, 1, 1], [], []>} : vector<16x128xbf16>, vector<128x128xbf16>, vector<16x128xf32> -> vector<16x128xf32>
    %42 = arith.addf %38, %41 : vector<16x128xf32>
    %c1_53 = arith.constant 1 : index
    %c0_54 = arith.constant 0 : index
    %43 = vector.load %arg6[%c1_53, %c0_54] : memref<19x128xf32, #tpu.memory_space<vmem>>, vector<16x128xf32>
    tpu.vector_store %arg6[%c1_53, %c0_54], %42 {strides = array<i32>} : memref<19x128xf32, #tpu.memory_space<vmem>>, vector<16x128xf32>,
    %c0_55 = arith.constant 0 : index
    %c0_56 = arith.constant 0 : index
    %44 = tpu.strided_load %arg6[%c0_55, %c0_56] {strides = array<i32: 3, 1>} : memref<19x128xf32, #tpu.memory_space<vmem>>, vector<6x128xf32>
    %c1_57 = arith.constant 1 : index
    %c0_58 = arith.constant 0 : index
    %45 = tpu.strided_load %arg6[%c1_57, %c0_58] {strides = array<i32: 3, 1>} : memref<19x128xf32, #tpu.memory_space<vmem>>, vector<6x128xf32>
    %c2_59 = arith.constant 2 : index
    %c0_60 = arith.constant 0 : index
    %46 = tpu.strided_load %arg6[%c2_59, %c0_60] {strides = array<i32: 3, 1>} : memref<19x128xf32, #tpu.memory_space<vmem>>, vector<6x128xf32>
    %47 = arith.maximumf %44, %45 : vector<6x128xf32>
    %48 = arith.maximumf %47, %46 : vector<6x128xf32>
    %c0_61 = arith.constant 0 : index
    %c0_62 = arith.constant 0 : index
    %49 = vector.load %arg3[%c0_61, %c0_62] : memref<8x128xf32, #tpu.memory_space<vmem>>, vector<1x128xf32>
    %50 = vector.broadcast %49 : vector<1x128xf32> to vector<6x128xf32>
    %51 = arith.addf %48, %50 : vector<6x128xf32>
    %cst_63 = arith.constant dense<0.000000e+00> : vector<128xf32>
    %52 = vector.multi_reduction <add>, %51, %cst_63 [0] : vector<6x128xf32> to vector<128xf32>
    %53 = vector.shape_cast %52 : vector<128xf32> to vector<1x128xf32>
    %cst_64 = arith.constant 6.000000e+00 : f32
    %54 = vector.broadcast %cst_64 : f32 to vector<1x128xf32>
    %55 = arith.divf %53, %54 : vector<1x128xf32>
    %56 = vector.broadcast %55 : vector<1x128xf32> to vector<6x128xf32>
    %57 = arith.subf %51, %56 : vector<6x128xf32>
    %58 = arith.mulf %57, %57 : vector<6x128xf32>
    %cst_65 = arith.constant dense<0.000000e+00> : vector<128xf32>
    %59 = vector.multi_reduction <add>, %58, %cst_65 [0] : vector<6x128xf32> to vector<128xf32>
    %60 = vector.shape_cast %59 : vector<128xf32> to vector<1x128xf32>
    %cst_66 = arith.constant 6.000000e+00 : f32
    %61 = vector.broadcast %cst_66 : f32 to vector<1x128xf32>
    %62 = arith.divf %60, %61 : vector<1x128xf32>
    %63 = vector.broadcast %55 : vector<1x128xf32> to vector<6x128xf32>
    %64 = arith.subf %51, %63 : vector<6x128xf32>
    %cst_67 = arith.constant 9.99999974E-6 : f32
    %65 = vector.broadcast %cst_67 : f32 to vector<1x128xf32>
    %66 = arith.addf %62, %65 : vector<1x128xf32>
    %67 = math.rsqrt %66 : vector<1x128xf32>
    %68 = vector.broadcast %67 : vector<1x128xf32> to vector<6x128xf32>
    %69 = arith.mulf %64, %68 : vector<6x128xf32>
    %c1_68 = arith.constant 1 : index
    %c0_69 = arith.constant 0 : index
    %70 = vector.load %arg3[%c1_68, %c0_69] : memref<8x128xf32, #tpu.memory_space<vmem>>, vector<1x128xf32>
    %71 = vector.broadcast %70 : vector<1x128xf32> to vector<6x128xf32>
    %72 = arith.mulf %69, %71 : vector<6x128xf32>
    %c2_70 = arith.constant 2 : index
    %c0_71 = arith.constant 0 : index
    %73 = vector.load %arg3[%c2_70, %c0_71] : memref<8x128xf32, #tpu.memory_space<vmem>>, vector<1x128xf32>
    %74 = vector.broadcast %73 : vector<1x128xf32> to vector<6x128xf32>
    %75 = arith.addf %72, %74 : vector<6x128xf32>
    %cst_72 = arith.constant 0.000000e+00 : f32
    %76 = vector.broadcast %cst_72 : f32 to vector<6x128xf32>
    %77 = arith.cmpf oge, %75, %76 : vector<6x128xf32>
    %cst_73 = arith.constant 2.000000e-01 : f32
    %78 = vector.broadcast %cst_73 : f32 to vector<6x128xf32>
    %79 = arith.mulf %78, %75 : vector<6x128xf32>
    %80 = arith.select %77, %75, %79 : vector<6x128xi1>, vector<6x128xf32>
    %c0_74 = arith.constant 0 : index
    %c0_75 = arith.constant 0 : index
    %c0_76 = arith.constant 0 : index
    %81 = vector.load %arg5[%c0_74, %c0_75, %c0_76] : memref<1x6x128xf32, #tpu.memory_space<vmem>>, vector<1x6x128xf32>
    %82 = vector.shape_cast %81 : vector<1x6x128xf32> to vector<6x128xf32>
    %83 = vector.shape_cast %80 : vector<6x128xf32> to vector<1x6x128xf32>
    tpu.vector_store %arg5[%c0_74, %c0_75, %c0_76], %83 {strides = array<i32>} : memref<1x6x128xf32, #tpu.memory_space<vmem>>, vector<1x6x128xf32>,
    return
  }
  func.func @transform_0(%arg0: i32) -> (i32, i32, i32) {
    %c0_i32 = arith.constant 0 : i32
    %c0_i32_0 = arith.constant 0 : i32
    %c0_i32_1 = arith.constant 0 : i32
    return %arg0, %c0_i32, %c0_i32_0 : i32, i32, i32
  }
  func.func @transform_1(%arg0: i32) -> (i32, i32, i32) {
    %c0_i32 = arith.constant 0 : i32
    %c0_i32_0 = arith.constant 0 : i32
    %c0_i32_1 = arith.constant 0 : i32
    %c0_i32_2 = arith.constant 0 : i32
    return %c0_i32, %c0_i32_0, %c0_i32_1 : i32, i32, i32
  }
  func.func @transform_2(%arg0: i32) -> (i32, i32) {
    %c0_i32 = arith.constant 0 : i32
    %c0_i32_0 = arith.constant 0 : i32
    %c0_i32_1 = arith.constant 0 : i32
    return %c0_i32, %c0_i32_0 : i32, i32
  }
  func.func @transform_3(%arg0: i32) -> (i32, i32, i32) {
    %c0_i32 = arith.constant 0 : i32
    %c0_i32_0 = arith.constant 0 : i32
    %c0_i32_1 = arith.constant 0 : i32
    return %arg0, %c0_i32, %c0_i32_0 : i32, i32, i32
  }
  func.func @transform_4(%arg0: i32) -> (i32, i32, i32) {
    %c0_i32 = arith.constant 0 : i32
    %c0_i32_0 = arith.constant 0 : i32
    %c0_i32_1 = arith.constant 0 : i32
    return %arg0, %c0_i32, %c0_i32_0 : i32, i32, i32
  }
}

</mosaic_0001>

<bundles_post_ra>
// kernel: sincnet_forward.3
= control target key start
LH: loop header
LB: loop body
LE: loop exit
PB: predicated region body
PF: predicated region fallthrough
CT: control target
= control target key end

     0   :  { %s1320_s12 = smov 0   ;;  %s1322_s13 = smov 0   ;;  %s1459_s0 = inlined_call_operand.vmem [shape: bf16[2,192,256], index: 0, kind: input, shape index: {}]   ;;  %s1460_s1 = inlined_call_operand.vmem [shape: bf16[256,128], index: 1, kind: input, shape index: {}]   ;;  %s1461_s2 = inlined_call_operand.vmem [shape: bf16[2,64,128], index: 2, kind: output, shape index: {0}]   ;;  %s1462_s3 = inlined_call_operand.vmem [shape: f32[2,1,2,128], index: 3, kind: output, shape index: {1}]  }
   0x1   :  { %s1324_s14 = smov 0  }
   0x2 LB: > { %s26_s15 = sadd.s32 1, %s1294_s13  ;;  %p1008_p0 = scmp.ge.s32.totalorder %s1298_s14, 1  ;;  %s1298_s14 = sphi %s1324_s14, %s14_s14   ;;  %s1294_s13 = sphi %s1322_s13, %s1464_s13   ;;  %s1290_s12 = sphi %s1320_s12, %s1463_s12  }
   0x3   : > { %p28_p1 = scmp.ge.s32.totalorder %s26_s15, 2  ;;  %p164_p2 = scmp.lt.s32.totalorder %s1298_s14, 3 }
   0x5   : > { %s1466_s15 = smov (%p28_p1, %s26_s15), 0  ;;  %p165_p3 = pnand %p1008_p0, %p164_p2 }
   0x6   : > { %v1224_v0 = vld [vmem:[%s1460_s1 + $0x40] sm:$0xff] (!%p165_p3)   ;;  %v1226_v2 = vld [vmem:[%s1460_s1 + $0x48] sm:$0xff] (!%p165_p3)   ;;  %p205_p4 = scmp.lt.s32.totalorder (!%p165_p3), %s1290_s12, 1  ;;  %v1228_v4 = vld [vmem:[%s1460_s1 + $0x50] sm:$0xff] (!%p165_p3)   ;;  %vm870_vm1 = vcmask (!%p165_p3), 1040384  }
   0x7   : > { %168 = sbr.rel (%p165_p3) target bundleno = 334 (0x14e), region = 28  ;;  %v1225_v1 = vld [vmem:[%s1460_s1] sm:$0xff] (!%p165_p3)   ;;  %1095 = vmatprep.subr.bf16.mxu0 (!%p165_p3), %v1224_v0  ;;  %1183 = vmatprep.subr.bf16.mxu1 (!%p165_p3), %v1224_v0  ;;  %v1227_v3 = vld [vmem:[%s1460_s1 + $0x8] sm:$0xff] (!%p165_p3)   ;;  %v1229_v5 = vld [vmem:[%s1460_s1 + $0x10] sm:$0xff] (!%p165_p3)  }
   0x8   : > { %1096 = vmatpush3.bf16.msra.mxu0 (!%p165_p3), %v1225_v1  ;;  %1191 = vmatpush3.bf16.msra.mxu1 (!%p165_p3), %v1225_v1  ;;  %v1230_v6 = vld [vmem:[%s1460_s1 + $0x58] sm:$0xff] (!%p165_p3)   ;;  %v1232_v8 = vld [vmem:[%s1460_s1 + $0x60] sm:$0xff] (!%p165_p3)   ;;  %v1234_v10 = vld [vmem:[%s1460_s1 + $0x68] sm:$0xff] (!%p165_p3)  }
   0x9   : > { %1097 = vmatprep.subr.bf16.mxu0 (!%p165_p3), %v1226_v2  ;;  %1184 = vmatprep.subr.bf16.mxu1 (!%p165_p3), %v1226_v2  ;;  %v1231_v7 = vld [vmem:[%s1460_s1 + $0x18] sm:$0xff] (!%p165_p3)   ;;  %v1233_v9 = vld [vmem:[%s1460_s1 + $0x20] sm:$0xff] (!%p165_p3)   ;;  %v1235_v13 = vld [vmem:[%s1460_s1 + $0x28] sm:$0xff] (!%p165_p3)  }
   0xa   : > { %v1236_v14 = vld [vmem:[%s1460_s1 + $0x70] sm:$0xff] (!%p165_p3)   ;;  %v1238_v16 = vld [vmem:[%s1460_s1 + $0x78] sm:$0xff] (!%p165_p3)  }
   0xb   : > { %v1237_v15 = vld [vmem:[%s1460_s1 + $0x30] sm:$0xff] (!%p165_p3)   ;;  %v1239_v17 = vld [vmem:[%s1460_s1 + $0x38] sm:$0xff] (!%p165_p3)  }
   0xc   : > { %1098 = vmatpush3.bf16.msra.mxu0 (!%p165_p3), %v1227_v3  ;;  %1192 = vmatpush3.bf16.msra.mxu1 (!%p165_p3), %v1227_v3 }
   0xd   : > { %1099 = vmatprep.subr.bf16.mxu0 (!%p165_p3), %v1228_v4  ;;  %1185 = vmatprep.subr.bf16.mxu1 (!%p165_p3), %v1228_v4 }
   0xe   : > { %s1468_s12 = smov (!%p205_p4, %s1290_s12), 1 }
   0xf   : > { %s1199_s30 = smul.u32 192, %s1468_s12  ;;  %s1063_s29 = sshll.u32 %s1468_s12, 5 }
  0x10   : > { %1100 = vmatpush3.bf16.msra.mxu0 %v1229_v5  ;;  %1193 = vmatpush3.bf16.msra.mxu1 %v1229_v5  ;;  %s1426_s5 = scalar_lea.vmem %s1461_s2, %s1063_s29  ;;  %s1012_s6 = sshll.u32 %s1468_s12, 1 }
  0x11   : > { %1101 = vmatprep.subr.bf16.mxu0 %v1230_v6  ;;  %1186 = vmatprep.subr.bf16.mxu1 %v1230_v6  ;;  %s1371_s10 = scalar_lea.vmem %s1459_s0, %s1199_s30  ;;  %s231_s9 = scalar_lea.vmem %s1462_s3, %s1012_s6 }
  0x12   : > { %v1242_v11 = vld [vmem:[%s1371_s10 + $0x4] ss:$8 sps:$4 sm:$0xff]   ;;  %v1240_v18 = vld [vmem:[%s1371_s10] ss:$8 sps:$4 sm:$0xff]   ;;  %v1246_v20 = vld [vmem:[%s1371_s10 + $0x14] ss:$8 sps:$4 sm:$0xff]  }
  0x13   : > { %v1245_v12 = vld [vmem:[%s1371_s10 + $0x64] ss:$8 sps:$4 sm:$0xff]   ;;  %537 = vmatprep.mubr.bf16.mxu0 %v1242_v11  ;;  %v1243_v19 = vld [vmem:[%s1371_s10 + $0x60] ss:$8 sps:$4 sm:$0xff]   ;;  %v1248_v21 = vld [vmem:[%s1371_s10 + $0x74] ss:$8 sps:$4 sm:$0xff]  }
  0x14   : > { %1102 = vmatpush3.bf16.msra.mxu0 %v1231_v7  ;;  %1194 = vmatpush3.bf16.msra.mxu1 %v1231_v7  ;;  %v1250_v22 = vld [vmem:[%s1371_s10 + $0x10] ss:$8 sps:$4 sm:$0xff]   ;;  %v1252_v24 = vld [vmem:[%s1371_s10 + $0x24] ss:$8 sps:$4 sm:$0xff]   ;;  %v1256_v26 = vld [vmem:[%s1371_s10 + $0x20] ss:$8 sps:$4 sm:$0xff]  }
  0x15   : > { %1103 = vmatprep.subr.bf16.mxu0 %v1232_v8  ;;  %1187 = vmatprep.subr.bf16.mxu1 %v1232_v8  ;;  %v1251_v23 = vld [vmem:[%s1371_s10 + $0x70] ss:$8 sps:$4 sm:$0xff]   ;;  %v1254_v25 = vld [vmem:[%s1371_s10 + $0x84] ss:$8 sps:$4 sm:$0xff]   ;;  %v1257_v27 = vld [vmem:[%s1371_s10 + $0x80] ss:$8 sps:$4 sm:$0xff]  }
  0x16   : > { %585 = vmatprep.mubr.bf16.mxu1 %v1245_v12  ;;  %v1258_v28 = vld [vmem:[%s1371_s10 + $0x34] ss:$8 sps:$4 sm:$0xff]   ;;  %v1262_v30 = vld [vmem:[%s1371_s10 + $0x30] ss:$8 sps:$4 sm:$0xff]   ;;  %v1264_v32 = vld [vmem:[%s1371_s10 + $0x44] ss:$8 sps:$4 sm:$0xff]  }
  0x17   : > { %v1260_v29 = vld [vmem:[%s1371_s10 + $0x94] ss:$8 sps:$4 sm:$0xff]   ;;  %v1263_v31 = vld [vmem:[%s1371_s10 + $0x90] ss:$8 sps:$4 sm:$0xff]   ;;  %v1266_v33 = vld [vmem:[%s1371_s10 + $0xa4] ss:$8 sps:$4 sm:$0xff]  }
  0x18   : > { %1104 = vmatpush3.bf16.msra.mxu0 %v1233_v9  ;;  %1195 = vmatpush3.bf16.msra.mxu1 %v1233_v9  ;;  %v1268_v34 = vld [vmem:[%s1371_s10 + $0x40] ss:$8 sps:$4 sm:$0xff]   ;;  %v1270_v36 = vld [vmem:[%s1371_s10 + $0x54] ss:$8 sps:$4 sm:$0xff]   ;;  %v1274_v38 = vld [vmem:[%s1371_s10 + $0x50] ss:$8 sps:$4 sm:$0xff]  }
  0x19   : > { %1105 = vmatprep.subr.bf16.mxu0 %v1234_v10  ;;  %1188 = vmatprep.subr.bf16.mxu1 %v1234_v10  ;;  %v1269_v35 = vld [vmem:[%s1371_s10 + $0xa0] ss:$8 sps:$4 sm:$0xff]   ;;  %v1272_v37 = vld [vmem:[%s1371_s10 + $0xb4] ss:$8 sps:$4 sm:$0xff]   ;;  %v1275_v39 = vld [vmem:[%s1371_s10 + $0xb0] ss:$8 sps:$4 sm:$0xff]  }
  0x1c   : > { %1106 = vmatpush3.bf16.msra.mxu0 %v1235_v13  ;;  %1196 = vmatpush3.bf16.msra.mxu1 %v1235_v13 }
  0x1d   : > { %1107 = vmatprep.subr.bf16.mxu0 %v1236_v14  ;;  %1189 = vmatprep.subr.bf16.mxu1 %v1236_v14 }
  0x20   : > { %1108 = vmatpush3.bf16.msra.mxu0 %v1237_v15  ;;  %1197 = vmatpush3.bf16.msra.mxu1 %v1237_v15 }
  0x21   : > { %1109 = vmatprep.subr.bf16.mxu0 %v1238_v16  ;;  %1190 = vmatprep.subr.bf16.mxu1 %v1238_v16 }
  0x24   : > { %1110 = vmatpush3.bf16.msra.mxu0 %v1239_v17  ;;  %1198 = vmatpush3.bf16.msra.mxu1 %v1239_v17 }
  0x27   : > { %538 = vmatmul.mubr.bf16.vlgmr.msra.gmra.mrb[0].mxu0 %v1240_v18  ;;  %586 = vmatmul.mubr.bf16.vlgmr.msra.gmra.mrb[0].mxu1 %v1243_v19 }
  0x28   : > { %545 = vmatprep.mubr.bf16.mxu0 %v1246_v20  ;;  %593 = vmatprep.mubr.bf16.mxu1 %v1248_v21 }
  0x2f   : > { %546 = vmatmul.mubr.bf16.gmra.mrb[4].mxu0 %v1250_v22  ;;  %594 = vmatmul.mubr.bf16.gmra.mrb[4].mxu1 %v1251_v23 }
  0x30   : > { %553 = vmatprep.mubr.bf16.mxu0 %v1252_v24  ;;  %601 = vmatprep.mubr.bf16.mxu1 %v1254_v25 }
  0x37   : > { %554 = vmatmul.mubr.bf16.gmra.mrb[8].mxu0 %v1256_v26  ;;  %602 = vmatmul.mubr.bf16.gmra.mrb[8].mxu1 %v1257_v27 }
  0x38   : > { %561 = vmatprep.mubr.bf16.mxu0 %v1258_v28  ;;  %609 = vmatprep.mubr.bf16.mxu1 %v1260_v29 }
  0x3f   : > { %562 = vmatmul.mubr.bf16.gmra.mrb[12].mxu0 %v1262_v30  ;;  %610 = vmatmul.mubr.bf16.gmra.mrb[12].mxu1 %v1263_v31 }
  0x40   : > { %569 = vmatprep.mubr.bf16.mxu0 %v1264_v32  ;;  %617 = vmatprep.mubr.bf16.mxu1 %v1266_v33 }
  0x47   : > { %570 = vmatmul.mubr.bf16.gmra.mrb[16].mxu0 %v1268_v34  ;;  %618 = vmatmul.mubr.bf16.gmra.mrb[16].mxu1 %v1269_v35 }
  0x48   : > { %577 = vmatprep.mubr.bf16.mxu0 %v1270_v36  ;;  %625 = vmatprep.mubr.bf16.mxu1 %v1272_v37 }
  0x4f   : > { %578 = vmatmul.mubr.bf16.gmra.mrb[20].mxu0 %v1274_v38  ;;  %626 = vmatmul.mubr.bf16.gmra.mrb[20].mxu1 %v1275_v39 }
  0xfa   : > { %v1111_v40 = vpop.f32.mrb[0].mxu0  ;;  %v1147_v41 = vpop.f32.mrb[0].mxu1 }
  0xfb   : > { %v1112_v42 = vpop.f32.mrb[1].mxu0  ;;  %v1148_v43 = vpop.f32.mrb[1].mxu1 }
  0xfc   : > { %v1113_v44 = vadd.f32 %v1112_v42, %v1111_v40  ;;  %v1114_v45 = vpop.f32.mrb[2].mxu0  ;;  %v1149_v46 = vadd.f32 %v1148_v43, %v1147_v41  ;;  %v1150_v47 = vpop.f32.mrb[2].mxu1 }
  0xfd   : > { %v1115_v48 = vpop.f32.mrb[3].mxu0  ;;  %v1151_v49 = vpop.f32.mrb[3].mxu1 }
  0xfe   : > { %v634_v50 = vand.u32 2147483647, %v1113_v44  ;;  %v1116_v51 = vadd.f32 %v1115_v48, %v1114_v45  ;;  %v646_v52 = vand.u32 2147483647, %v1149_v46  ;;  %v1152_v53 = vadd.f32 %v1151_v49, %v1150_v47 }
 0x100   : > { %658 = vst [vmem:[#allocation2] sm:$0xff] %v634_v50  ;;  %v635_v54 = vand.u32 2147483647, %v1116_v51  ;;  %670 = vst [vmem:[#allocation2 + $0x60] sm:$0xff] %v646_v52  ;;  %v647_v55 = vand.u32 2147483647, %v1152_v53 }
 0x102   : > { %659 = vst [vmem:[#allocation2 + $0x8] sm:$0xff] %v635_v54  ;;  %v1117_v56 = vpop.f32.mrb[4].mxu0  ;;  %671 = vst [vmem:[#allocation2 + $0x68] sm:$0xff] %v647_v55  ;;  %v1153_v57 = vpop.f32.mrb[4].mxu1 }
 0x103   : > { %v1118_v58 = vpop.f32.mrb[5].mxu0  ;;  %v1154_v59 = vpop.f32.mrb[5].mxu1 }
 0x104   : > { %v1119_v60 = vadd.f32 %v1118_v58, %v1117_v56  ;;  %v1120_v61 = vpop.f32.mrb[6].mxu0  ;;  %v1155_v62 = vadd.f32 %v1154_v59, %v1153_v57  ;;  %v1156_v63 = vpop.f32.mrb[6].mxu1 }
 0x105   : > { %v1121_v0 = vpop.f32.mrb[7].mxu0  ;;  %v1157_v1 = vpop.f32.mrb[7].mxu1 }
 0x106   : > { %v636_v2 = vand.u32 2147483647, %v1119_v60  ;;  %v1122_v3 = vadd.f32 %v1121_v0, %v1120_v61  ;;  %v648_v4 = vand.u32 2147483647, %v1155_v62  ;;  %v1158_v5 = vadd.f32 %v1157_v1, %v1156_v63 }
 0x108   : > { %660 = vst [vmem:[#allocation2 + $0x10] sm:$0xff] %v636_v2  ;;  %v637_v6 = vand.u32 2147483647, %v1122_v3  ;;  %672 = vst [vmem:[#allocation2 + $0x70] sm:$0xff] %v648_v4  ;;  %v649_v7 = vand.u32 2147483647, %v1158_v5 }
 0x10a   : > { %661 = vst [vmem:[#allocation2 + $0x18] sm:$0xff] %v637_v6  ;;  %673 = vst [vmem:[#allocation2 + $0x78] sm:$0xff] %v649_v7  ;;  %v1123_v8 = vpop.f32.mrb[8].mxu0  ;;  %v1159_v9 = vpop.f32.mrb[8].mxu1 }
 0x10b   : > { %v1124_v10 = vpop.f32.mrb[9].mxu0  ;;  %v1160_v11 = vpop.f32.mrb[9].mxu1 }
 0x10c   : > { %v1125_v12 = vadd.f32 %v1124_v10, %v1123_v8  ;;  %v1161_v13 = vadd.f32 %v1160_v11, %v1159_v9  ;;  %v1126_v14 = vpop.f32.mrb[10].mxu0  ;;  %v1162_v15 = vpop.f32.mrb[10].mxu1 }
 0x10d   : > { %v1127_v16 = vpop.f32.mrb[11].mxu0  ;;  %v1163_v17 = vpop.f32.mrb[11].mxu1 }
 0x10e   : > { %v638_v18 = vand.u32 2147483647, %v1125_v12  ;;  %v650_v19 = vand.u32 2147483647, %v1161_v13  ;;  %v1128_v20 = vadd.f32 %v1127_v16, %v1126_v14  ;;  %v1164_v21 = vadd.f32 %v1163_v17, %v1162_v15 }
 0x10f   : > { %v682_v32 = vld [vmem:[#allocation2] ss:$3 sm:$0xff]  ;;  %v698_v35 = vld [vmem:[#allocation2 + $0x1] ss:$3 sm:$0xff]  ;;  %v722_v45 = vld [vmem:[#allocation2 + $0x62] ss:$3 sm:$0xff] }
 0x110   : > { %662 = vst [vmem:[#allocation2 + $0x20] sm:$0xff] %v638_v18  ;;  %674 = vst [vmem:[#allocation2 + $0x80] sm:$0xff] %v650_v19  ;;  %v639_v22 = vand.u32 2147483647, %v1128_v20  ;;  %v651_v23 = vand.u32 2147483647, %v1164_v21  ;;  %v729_v44 = vmax.f32 %v682_v32, %v698_v35 }
 0x111   : > { %v690_v40 = vld [vmem:[#allocation2 + $0x60] ss:$3 sm:$0xff]  ;;  %v706_v41 = vld [vmem:[#allocation2 + $0x61] ss:$3 sm:$0xff]  ;;  %v714_v53 = vld [vmem:[#allocation2 + $0x2] ss:$3 sm:$0xff] }
 0x112   : > { %v1129_v24 = vpop.f32.mrb[12].mxu0  ;;  %v1165_v25 = vpop.f32.mrb[12].mxu1  ;;  %663 = vst [vmem:[#allocation2 + $0x28] sm:$0xff] %v639_v22  ;;  %675 = vst [vmem:[#allocation2 + $0x88] sm:$0xff] %v651_v23  ;;  %v733_v46 = vmax.f32 %v690_v40, %v706_v41  ;;  %v1419_v58 = vmax.f32 %v729_v44, %v714_v53 }
 0x113   : > { %v1130_v26 = vpop.f32.mrb[13].mxu0  ;;  %v1166_v27 = vpop.f32.mrb[13].mxu1 }
 0x114   : > { %v1131_v28 = vadd.f32 %v1130_v26, %v1129_v24  ;;  %v1132_v29 = vpop.f32.mrb[14].mxu0  ;;  %v1167_v30 = vadd.f32 %v1166_v27, %v1165_v25  ;;  %v1168_v31 = vpop.f32.mrb[14].mxu1  ;;  %v1421_v62 = vmax.f32 %v733_v46, %v722_v45  ;;  %v849_v45 = vmul.f32 %v1419_v58, %v1419_v58 }
 0x115   : > { %v1133_v33 = vpop.f32.mrb[15].mxu0  ;;  %v1169_v34 = vpop.f32.mrb[15].mxu1 }
 0x116   : > { %v640_v36 = vand.u32 2147483647, %v1131_v28  ;;  %v1134_v37 = vadd.f32 %v1133_v33, %v1132_v29  ;;  %v652_v38 = vand.u32 2147483647, %v1167_v30  ;;  %v1170_v39 = vadd.f32 %v1169_v34, %v1168_v31 }
 0x117   : > { %v785_v28 = vlaneseq }
 0x118   : > { %664 = vst [vmem:[#allocation2 + $0x30] sm:$0xff] %v640_v36  ;;  %v641_v42 = vand.u32 2147483647, %v1134_v37  ;;  %676 = vst [vmem:[#allocation2 + $0x90] sm:$0xff] %v652_v38  ;;  %v653_v43 = vand.u32 2147483647, %v1170_v39 }
 0x119   : > { %v684_v47 = vld [vmem:[#allocation2 + $0x18] ss:$3 sm:$0xff]  ;;  %v700_v48 = vld [vmem:[#allocation2 + $0x19] ss:$3 sm:$0xff]  ;;  %v724_v52 = vld [vmem:[#allocation2 + $0x7a] ss:$3 sm:$0xff] }
 0x11a   : > { %665 = vst [vmem:[#allocation2 + $0x38] sm:$0xff] %v641_v42  ;;  %677 = vst [vmem:[#allocation2 + $0x98] sm:$0xff] %v653_v43  ;;  %v730_v49 = vmax.f32 %v684_v47, %v700_v48  ;;  %v692_v50 = vld [vmem:[#allocation2 + $0x78] ss:$3 sm:$0xff]  ;;  %v708_v51 = vld [vmem:[#allocation2 + $0x79] ss:$3 sm:$0xff] }
 0x11b   : > { %v716_v54 = vld [vmem:[#allocation2 + $0x1a] ss:$3 sm:$0xff]  ;;  %v734_v55 = vmax.f32 %v692_v50, %v708_v51  ;;  %v1135_v56 = vpop.f32.mrb[16].mxu0  ;;  %v1171_v57 = vpop.f32.mrb[16].mxu1  ;;  %v786_v34 = vshrl.u32 %v785_v28, 7 }
 0x11c   : > { %v738_v59 = vmax.f32 %v730_v49, %v716_v54  ;;  %v1136_v60 = vpop.f32.mrb[17].mxu0  ;;  %v1172_v61 = vpop.f32.mrb[17].mxu1 }
 0x11d   : > { %v1428_v63 = vmax.f32 %v734_v55, %v724_v52  ;;  %v1137_v0 = vadd.f32 %v1136_v60, %v1135_v56  ;;  %v1138_v1 = vpop.f32.mrb[18].mxu0  ;;  %v1173_v2 = vadd.f32 %v1172_v61, %v1171_v57  ;;  %v1174_v3 = vpop.f32.mrb[18].mxu1  ;;  %v792_v40 = vadd.s32 48, %v786_v34 }
 0x11e   : > { %v1075_v4 = vpack.c.bf16 %v738_v59, %v1419_v58  ;;  %v1139_v5 = vpop.f32.mrb[19].mxu0  ;;  %v1175_v6 = vpop.f32.mrb[19].mxu1  ;;  %v850_v39 = vmul.f32 %v738_v59, %v738_v59  ;;  %v836_v46 = vadd.f32 %v738_v59, %v1419_v58  ;;  %v853_v59 = vmul.f32 %v1421_v62, %v1421_v62 }
 0x11f   : > { %v1085_v7 = vpack.c.bf16 %v1428_v63, %v1421_v62  ;;  %v642_v8 = vand.u32 2147483647, %v1137_v0  ;;  %v1140_v9 = vadd.f32 %v1139_v5, %v1138_v1  ;;  %v654_v10 = vand.u32 2147483647, %v1173_v2 }
 0x120   : > { %1076 = vst [vmem:[%s1426_s5] sm:$0xff] %v1075_v4   ;;  %v1176_v11 = vadd.f32 %v1175_v6, %v1174_v3  ;;  %v857_v54 = vadd.f32 %v850_v39, %v849_v45  ;;  %vm810_vm0 = vcmp.lt.s32.totalorder %v792_v40, 54  ;;  %v854_v6 = vmul.f32 %v1428_v63, %v1428_v63 }
 0x121   : > { %1093 = vst [vmem:[%s1426_s5 + $0x10] sm:$0xff] %v1085_v7   ;;  %666 = vst [vmem:[#allocation2 + $0x40] sm:$0xff] %v642_v8  ;;  %v643_v12 = vand.u32 2147483647, %v1140_v9 }
 0x122   : > { %v1141_v13 = vpop.f32.mrb[20].mxu0  ;;  %v1177_v14 = vpop.f32.mrb[20].mxu1  ;;  %678 = vst [vmem:[#allocation2 + $0xa0] sm:$0xff] %v654_v10  ;;  %v655_v15 = vand.u32 2147483647, %v1176_v11 }
 0x123   : > { %v1142_v16 = vpop.f32.mrb[21].mxu0  ;;  %v1178_v17 = vpop.f32.mrb[21].mxu1  ;;  %667 = vst [vmem:[#allocation2 + $0x48] sm:$0xff] %v643_v12 }
 0x124   : > { %v1143_v18 = vadd.f32 %v1142_v16, %v1141_v13  ;;  %v1179_v19 = vadd.f32 %v1178_v17, %v1177_v14  ;;  %v1144_v20 = vpop.f32.mrb[22].mxu0  ;;  %v1180_v21 = vpop.f32.mrb[22].mxu1  ;;  %679 = vst [vmem:[#allocation2 + $0xa8] sm:$0xff] %v655_v15 }
 0x125   : > { %v1145_v22 = vpop.f32.mrb[23].mxu0  ;;  %v1181_v23 = vpop.f32.mrb[23].mxu1 }
 0x126   : > { %v644_v24 = vand.u32 2147483647, %v1143_v18  ;;  %v656_v25 = vand.u32 2147483647, %v1179_v19  ;;  %v1146_v26 = vadd.f32 %v1145_v22, %v1144_v20  ;;  %v1182_v27 = vadd.f32 %v1181_v23, %v1180_v21 }
 0x128   : > { %668 = vst [vmem:[#allocation2 + $0x50] sm:$0xff] %v644_v24  ;;  %680 = vst [vmem:[#allocation2 + $0xb0] sm:$0xff] %v656_v25  ;;  %v645_v29 = vand.u32 2147483647, %v1146_v26  ;;  %v657_v30 = vand.u32 2147483647, %v1182_v27 }
 0x129   : > { %v686_v31 = vld [vmem:[#allocation2 + $0x30] ss:$3 sm:$0xff]  ;;  %v702_v32 = vld [vmem:[#allocation2 + $0x31] ss:$3 sm:$0xff]  ;;  %v718_v35 = vld [vmem:[#allocation2 + $0x32] ss:$3 sm:$0xff] }
 0x12a   : > { %v731_v33 = vmax.f32 %v686_v31, %v702_v32  ;;  %669 = vst [vmem:[#allocation2 + $0x58] sm:$0xff] %v645_v29  ;;  %681 = vst [vmem:[#allocation2 + $0xb8] sm:$0xff] %v657_v30  ;;  %v694_v37 = vld [vmem:[#allocation2 + $0x90] ss:$3 sm:$0xff]  ;;  %v710_v38 = vld [vmem:[#allocation2 + $0x91] ss:$3 sm:$0xff] }
 0x12b   : > { %v726_v41 = vld [vmem:[#allocation2 + $0x92] ss:$3 sm:$0xff]  ;;  %v735_v42 = vmax.f32 %v694_v37, %v710_v38 }
 0x12c   : > { %v739_v36 = vmax.f32 %v731_v33, %v718_v35 }
 0x12d   : > { %v743_v57 = vmax.f32 %v735_v42, %v726_v41 }
 0x12e   : > { %v851_v47 = vmul.f32 %v739_v36, %v739_v36  ;;  %v837_v55 = vadd.f32 %v836_v46, %v739_v36 }
 0x12f   : > { %v834_v5 = vsel %vm810_vm0, %v743_v57, 0.0 }
 0x130   : > { %v858_v61 = vadd.f32 %v857_v54, %v851_v47  ;;  %v855_v9 = vmul.f32 %v834_v5, %v834_v5 }
 0x131   : > { %v688_v43 = vld [vmem:[#allocation2 + $0x48] ss:$3 sm:$0xff]  ;;  %v704_v44 = vld [vmem:[#allocation2 + $0x49] ss:$3 sm:$0xff]  ;;  %v728_v51 = vld [vmem:[#allocation2 + $0xaa] ss:$3 sm:$0xff] }
 0x132   : > { %v732_v48 = vmax.f32 %v688_v43, %v704_v44  ;;  %v696_v49 = vld [vmem:[#allocation2 + $0xa8] ss:$3 sm:$0xff]  ;;  %v712_v50 = vld [vmem:[#allocation2 + $0xa9] ss:$3 sm:$0xff]  ;;  %v720_v52 = vld [vmem:[#allocation2 + $0x4a] ss:$3 sm:$0xff] }
 0x133   : > { %v736_v53 = vmax.f32 %v696_v49, %v712_v50 }
 0x134   : > { %v740_v56 = vmax.f32 %v732_v48, %v720_v52 }
 0x135   : > { %v744_v60 = vmax.f32 %v736_v53, %v728_v51 }
 0x136   : > { %v1080_v0 = vpack.c.bf16 %v740_v56, %v739_v36  ;;  %v838_v1 = vadd.f32 %v837_v55, %v740_v56  ;;  %v852_v2 = vmul.f32 %v740_v56, %v740_v56 }
 0x137   : > { %v1090_v58 = vpack.c.bf16 %v744_v60, %v743_v57 }
 0x138   : > { %1092 = vst [vmem:[%s1426_s5 + $0x8] sm:$0xff] %v1080_v0   ;;  %v839_v3 = vadd.f32 %v838_v1, %v1421_v62  ;;  %v859_v4 = vadd.f32 %v858_v61, %v852_v2 }
 0x139   : > { %1094 = vst [vmem:[%s1426_s5 + $0x18] sm:$0xff] %v1090_v58  }
 0x13a   : > { %v840_v7 = vadd.f32 %v839_v3, %v1428_v63  ;;  %v860_v8 = vadd.f32 %v859_v4, %v853_v59 }
 0x13c   : > { %v841_v10 = vadd.f32 %v840_v7, %v834_v5  ;;  %v861_v11 = vadd.f32 %v860_v8, %v854_v6 }
 0x13e   : > { %v843_v12 = vrot.slane %v841_v10, 4  ;;  %v862_v13 = vadd.f32 %v861_v11, %v855_v9 }
 0x140   : > { %v844_v14 = vadd.f32 %v843_v12, %v841_v10  ;;  %v864_v15 = vrot.slane %v862_v13, 4 }
 0x142   : > { %v845_v16 = vrot.slane %v844_v14, 2  ;;  %v865_v17 = vadd.f32 %v864_v15, %v862_v13 }
 0x144   : > { %v846_v62 = vadd.f32 %v845_v16, %v844_v14  ;;  %v866_v18 = vrot.slane %v865_v17, 2 }
 0x146   : > { %v847_v19 = vrot.slane %v846_v62, 1  ;;  %v867_v20 = vadd.f32 %v866_v18, %v865_v17 }
 0x148   : > { %v868_v21 = vrot.slane %v867_v20, 1  ;;  %v848_v63 = vadd.f32 %v847_v19, %v846_v62 }
 0x14a   : > { %v869_v22 = vadd.f32 %v868_v21, %v867_v20 }
 0x14c   : > { %v871_v23 = vsel %vm870_vm1, %v848_v63, %v869_v22 }
 0x14d   : > { %872 = vst [vmem:[%s231_s9] sm:$0x3] %v871_v23 }
 0x14e PF: > { %s14_s14 = sadd.s32 1, %s1298_s14   ;;  %s1463_s12 = smov %s1294_s13 }
 0x14f   : > { %p11_p5 = scmp.ge.s32.totalorder %s14_s14, 4   ;;  %s1464_s13 = smov %s1466_s15 }
 0x151   :  { %13 = sbr.rel (!%p11_p5) target bundleno = 2 (0x2), region = 93 }

// kernel: sincnet_forward.5
= control target key start
LH: loop header
LB: loop body
LE: loop exit
PB: predicated region body
PF: predicated region fallthrough
CT: control target
= control target key end

     0   :  { %s1374_s15 = smov 0   ;;  %s1558_s0 = inlined_call_operand.vmem [shape: bf16[2,18,128], index: 0, kind: input, shape index: {}]   ;;  %s1559_s1 = inlined_call_operand.vmem [shape: bf16[5,128,128], index: 1, kind: input, shape index: {}]   ;;  %s1560_s2 = inlined_call_operand.vmem [shape: f32[8,128], index: 2, kind: input, shape index: {}]   ;;  %s1561_s3 = inlined_call_operand.vmem [shape: f32[2,2,128], index: 3, kind: input, shape index: {}]   ;;  %s1562_s4 = inlined_call_operand.vmem [shape: f32[2,6,128], index: 4, kind: output, shape index: {}]  }
   0x1 LB: > { %s1002_s16 = sadd.s32 4294967295, %s1344_s15   ;;  %p1006_p0 = scmp.ge.s32.totalorder %s1344_s15, 1  ;;  %s1344_s15 = sphi %s1374_s15, %s14_s15  }
   0x2   : > { %p171_p1 = scmp.lt.s32.totalorder %s1344_s15, 3 }
   0x4   : > { %p172_p2 = pnand %p1006_p0, %p171_p1 }
   0x5   : > { %v1287_v0 = vld [vmem:[%s1559_s1] sm:$0xff] (!%p172_p2)   ;;  %v1346_v1 = vmov (!%p172_p2), 0.0   ;;  %v1288_v2 = vld [vmem:[%s1559_s1 + $0x8] sm:$0xff] (!%p172_p2)   ;;  %vm1347_vm0 = vmmov (!%p172_p2), 0   ;;  %p200_p3 = scmp.lt.s32.totalorder (!%p172_p2), %s1002_s16, 1  ;;  %v1289_v5 = vld [vmem:[%s1559_s1 + $0x10] sm:$0xff] (!%p172_p2)  }
   0x6   : > { %175 = sbr.rel (%p172_p2) target bundleno = 389 (0x185), region = 36  ;;  %1175 = vmatprep.subr.bf16.mxu0 (!%p172_p2), %v1346_v1  ;;  %215 = vst [vmem:[#allocation2 + $0x1] sm:$0xff] (!%p172_p2), %v1346_v1  ;;  %216 = vst [vmem:[#allocation2 + $0x9] sm:$0xff] (!%p172_p2), %v1346_v1  ;;  %1191 = vmatprep.mubr.msk.bf16.mxu0 (!%p172_p2), %vm1347_vm0, %v1346_v1  ;;  %v1290_v3 = vld [vmem:[%s1559_s1 + $0x40] sm:$0xff] (!%p172_p2)   ;;  %v1292_v4 = vld [vmem:[%s1559_s1 + $0x48] sm:$0xff] (!%p172_p2)   ;;  %vm787_vm2 = vcmask (!%p172_p2), 1046528  }
   0x7   : > { %217 = vst [vmem:[#allocation2 + $0x11] sm:$0x3] (!%p172_p2), %v1346_v1  ;;  %1176 = vmatpush3.bf16.msra.mxu0 (!%p172_p2), %v1287_v0  ;;  %1195 = vmatprep.subr.bf16.mxu1 (!%p172_p2), %v1290_v3  ;;  %v1294_v6 = vld [vmem:[%s1559_s1 + $0x50] sm:$0xff] (!%p172_p2)   ;;  %v1291_v7 = vld [vmem:[%s1559_s1 + $0x18] sm:$0xff] (!%p172_p2)   ;;  %v1293_v9 = vld [vmem:[%s1559_s1 + $0x20] sm:$0xff] (!%p172_p2)   ;;  %vm898_vm3 = vcmask (!%p172_p2), 1045504  }
   0x8   : > { %1177 = vmatprep.subr.bf16.mxu0 (!%p172_p2), %v1346_v1  ;;  %1196 = vmatpush3.bf16.msra.mxu1 (!%p172_p2), %v1290_v3  ;;  %v1296_v8 = vld [vmem:[%s1559_s1 + $0x58] sm:$0xff] (!%p172_p2)   ;;  %v1298_v10 = vld [vmem:[%s1559_s1 + $0x60] sm:$0xff] (!%p172_p2)   ;;  %v1295_v11 = vld [vmem:[%s1559_s1 + $0x28] sm:$0xff] (!%p172_p2)   ;;  %vm638_vm1 = vsmask.f32 (!%p172_p2), 7424 }
   0x9   : > { %1197 = vmatprep.subr.bf16.mxu1 (!%p172_p2), %v1292_v4  ;;  %v1300_v12 = vld [vmem:[%s1559_s1 + $0x68] sm:$0xff] (!%p172_p2)   ;;  %v1297_v14 = vld [vmem:[%s1559_s1 + $0x30] sm:$0xff] (!%p172_p2)   ;;  %v1299_v16 = vld [vmem:[%s1559_s1 + $0x38] sm:$0xff] (!%p172_p2)   ;;  %v1348_v61 = vmov (!%p172_p2), -3e+38  }
   0xa   : > { %v1303_v15 = vld [vmem:[%s1559_s1 + $0x70] sm:$0xff] (!%p172_p2)   ;;  %v1302_v17 = vld [vmem:[%s1559_s1 + $0x80] sm:$0xff] (!%p172_p2)   ;;  %v1305_v18 = vld [vmem:[%s1559_s1 + $0x78] sm:$0xff] (!%p172_p2)   ;;  %214 = vst [vmem:[#allocation2] sm:$0x1] (!%p172_p2), %v1348_v61 }
   0xb   : > { %1178 = vmatpush3.bf16.msra.mxu0 (!%p172_p2), %v1288_v2  ;;  %v1304_v20 = vld [vmem:[%s1559_s1 + $0x88] sm:$0xff] (!%p172_p2)   ;;  %v1309_v22 = vld [vmem:[%s1559_s1 + $0xc0] sm:$0xff] (!%p172_p2)   ;;  %v1307_v24 = vld [vmem:[%s1559_s1 + $0x90] sm:$0xff] (!%p172_p2)  }
   0xc   : > { %1179 = vmatprep.subr.bf16.mxu0 (!%p172_p2), %v1346_v1  ;;  %1198 = vmatpush3.bf16.msra.mxu1 (!%p172_p2), %v1292_v4  ;;  %v1311_v25 = vld [vmem:[%s1559_s1 + $0xc8] sm:$0xff] (!%p172_p2)   ;;  %v1310_v26 = vld [vmem:[%s1559_s1 + $0x98] sm:$0xff] (!%p172_p2)   ;;  %v1313_v27 = vld [vmem:[%s1559_s1 + $0xd0] sm:$0xff] (!%p172_p2)  }
   0xd   : > { %s1564_s16 = smov (!%p200_p3, %s1002_s16), 1  ;;  %1199 = vmatprep.subr.bf16.mxu1 %v1294_v6  ;;  %v1312_v30 = vld [vmem:[%s1559_s1 + $0xa0] sm:$0xff]   ;;  %v1315_v31 = vld [vmem:[%s1559_s1 + $0xd8] sm:$0xff]   ;;  %v1314_v38 = vld [vmem:[%s1559_s1 + $0xa8] sm:$0xff]  }
   0xe   : > { %s1275_s28 = smul.u32 12, %s1564_s16  ;;  %v1317_v39 = vld [vmem:[%s1559_s1 + $0xe0] sm:$0xff]   ;;  %v1316_v41 = vld [vmem:[%s1559_s1 + $0xb0] sm:$0xff]   ;;  %v1319_v42 = vld [vmem:[%s1559_s1 + $0xe8] sm:$0xff]   ;;  %s1008_s6 = sshll.u32 %s1564_s16, 3 }
   0xf   : > { %1180 = vmatpush3.bf16.msra.mxu0 %v1289_v5  ;;  %v1318_v43 = vld [vmem:[%s1559_s1 + $0xb8] sm:$0xff]   ;;  %v1323_v44 = vld [vmem:[%s1559_s1 + $0xf0] sm:$0xff]   ;;  %v1322_v47 = vld [vmem:[%s1559_s1 + $0x100] sm:$0xff]   ;;  %s212_s10 = scalar_lea.vmem %s1562_s4, %s1008_s6 }
  0x10   : > { %1181 = vmatprep.subr.bf16.mxu0 %v1346_v1  ;;  %s1421_s9 = scalar_lea.vmem %s1558_s0, %s1275_s28  ;;  %1200 = vmatpush3.bf16.msra.mxu1 %v1294_v6  ;;  %v1325_v45 = vld [vmem:[%s1559_s1 + $0xf8] sm:$0xff]   ;;  %v1324_v49 = vld [vmem:[%s1559_s1 + $0x108] sm:$0xff]   ;;  %v1328_v50 = vld [vmem:[%s1559_s1 + $0x110] sm:$0xff]  }
  0x11   : > { %1201 = vmatprep.subr.bf16.mxu1 %v1296_v8  ;;  %v1306_v13 = vld [vmem:[%s1421_s9] sm:$0xff]   ;;  %v1308_v21 = vld [vmem:[%s1421_s9 + $0x8] ss:$0 sps:$4 sm:$0x11]   ;;  %v1329_v51 = vld [vmem:[%s1559_s1 + $0x118] sm:$0xff]  }
  0x12   : > { %1211 = vmatprep.mubr.bf16.mxu1 %v1306_v13  ;;  %v1301_v19 = vld [vmem:[%s1421_s9] sm:$0xff]   ;;  %v1327_v29 = vld [vmem:[%s1421_s9 + $0x8] ss:$0 sps:$4 sm:$0x11]   ;;  %v1332_v54 = vld [vmem:[%s1559_s1 + $0x130] sm:$0xff]  }
  0x13   : > { %1182 = vmatpush3.bf16.msra.mxu0 %v1291_v7  ;;  %v1320_v23 = vld [vmem:[%s1421_s9] sm:$0xff]   ;;  %v647_v34 = vshll.u32 %v1327_v29, 16  ;;  %v1321_v46 = vld [vmem:[%s1421_s9 + $0x8] ss:$0 sps:$4 sm:$0x11]   ;;  %v651_v48 = vshrl.u32 %v1327_v29, 16 }
  0x14   : > { %1183 = vmatprep.subr.bf16.mxu0 %v1346_v1  ;;  %1202 = vmatpush3.bf16.msra.mxu1 %v1296_v8  ;;  %v1326_v28 = vld [vmem:[%s1421_s9] sm:$0xff]   ;;  %v1331_v53 = vld [vmem:[%s1559_s1 + $0x128] sm:$0xff]   ;;  %v1333_v57 = vld [vmem:[%s1559_s1 + $0x138] sm:$0xff]  }
  0x15   : > { %1203 = vmatprep.subr.bf16.mxu1 %v1298_v10  ;;  %v640_v32 = vshrl.u32 %v1326_v28, 16  ;;  %v642_v33 = vshll.u32 %v1326_v28, 16  ;;  %v649_v36 = vrot.slane %v647_v34, 1  ;;  %v1330_v52 = vld [vmem:[%s1559_s1 + $0x120] sm:$0xff]   ;;  %v221_v0 = vld [vmem:[#allocation2 + $0xb] sm:$0xff] }
  0x16   : > { %v1334_v55 = vld [vmem:[%s1421_s9] sm:$0xfe]   ;;  %v1335_v56 = vld [vmem:[%s1421_s9 + $0x8] ss:$0 sps:$4 sm:$0x11]  }
  0x17   : > { %1184 = vmatpush3.bf16.msra.mxu0 %v1293_v9  ;;  %v644_v35 = vrot.slane %v642_v33, 1  ;;  %v788_v58 = vrot.slane %v1334_v55, 1  ;;  %v789_v59 = vrot.slane %v1335_v56, 1  ;;  %v220_v62 = vld [vmem:[#allocation2 + $0x3] sm:$0xff] }
  0x18   : > { %1185 = vmatprep.subr.bf16.mxu0 %v1346_v1  ;;  %1204 = vmatpush3.bf16.msra.mxu1 %v1298_v10 }
  0x19   : > { %1205 = vmatprep.subr.bf16.mxu1 %v1300_v12  ;;  %v645_v37 = vor.u32 %v644_v35, %v640_v32  ;;  %v790_v60 = vsel %vm787_vm2, %v788_v58, %v789_v59 }
  0x1b   : > { %1186 = vmatpush3.bf16.msra.mxu0 %v1295_v11  ;;  %v650_v40 = vsel %vm638_vm1, %v645_v37, %v649_v36 }
  0x1c   : > { %1187 = vmatprep.subr.bf16.mxu0 %v1346_v1  ;;  %1206 = vmatpush3.bf16.msra.mxu1 %v1300_v12 }
  0x1d   : > { %1207 = vmatprep.subr.bf16.mxu1 %v1303_v15 }
  0x1f   : > { %1188 = vmatpush3.bf16.msra.mxu0 %v1297_v14 }
  0x20   : > { %1189 = vmatprep.subr.bf16.mxu0 %v1346_v1  ;;  %1208 = vmatpush3.bf16.msra.mxu1 %v1303_v15 }
  0x21   : > { %1209 = vmatprep.subr.bf16.mxu1 %v1305_v18 }
  0x23   : > { %1190 = vmatpush3.bf16.msra.mxu0 %v1299_v16 }
  0x24   : > { %1215 = vmatprep.subr.bf16.mxu0 %v1302_v17  ;;  %1210 = vmatpush3.bf16.msra.mxu1 %v1305_v18 }
  0x25   : > { %1235 = vmatprep.subr.bf16.mxu1 %v1309_v22 }
  0x26   : > { %1192 = vmatmul.mubr.bf16.vlgmr.msra.gmra.mrb[0].mxu0 %v1301_v19 }
  0x27   : > { %1216 = vmatpush3.bf16.msra.mxu0 %v1302_v17  ;;  %1231 = vmatprep.mubr.bf16.mxu0 %v1320_v23 }
  0x28   : > { %1217 = vmatprep.subr.bf16.mxu0 %v1304_v20  ;;  %1212 = vmatmul.mubr.bf16.vlgmr.msra.gmra.mrb[0].mxu1 %v1308_v21 }
  0x29   : > { %1236 = vmatpush3.bf16.msra.mxu1 %v1309_v22  ;;  %1251 = vmatprep.mubr.bf16.mxu1 %v650_v40 }
  0x2a   : > { %1237 = vmatprep.subr.bf16.mxu1 %v1311_v25 }
  0x2b   : > { %1218 = vmatpush3.bf16.msra.mxu0 %v1304_v20 }
  0x2c   : > { %1219 = vmatprep.subr.bf16.mxu0 %v1307_v24 }
  0x2d   : > { %1238 = vmatpush3.bf16.msra.mxu1 %v1311_v25 }
  0x2e   : > { %1239 = vmatprep.subr.bf16.mxu1 %v1313_v27 }
  0x2f   : > { %1220 = vmatpush3.bf16.msra.mxu0 %v1307_v24 }
  0x30   : > { %1221 = vmatprep.subr.bf16.mxu0 %v1310_v26 }
  0x31   : > { %1240 = vmatpush3.bf16.msra.mxu1 %v1313_v27 }
  0x32   : > { %1241 = vmatprep.subr.bf16.mxu1 %v1315_v31 }
  0x33   : > { %1222 = vmatpush3.bf16.msra.mxu0 %v1310_v26 }
  0x34   : > { %1223 = vmatprep.subr.bf16.mxu0 %v1312_v30 }
  0x35   : > { %1242 = vmatpush3.bf16.msra.mxu1 %v1315_v31 }
  0x36   : > { %1243 = vmatprep.subr.bf16.mxu1 %v1317_v39 }
  0x37   : > { %1224 = vmatpush3.bf16.msra.mxu0 %v1312_v30 }
  0x38   : > { %1225 = vmatprep.subr.bf16.mxu0 %v1314_v38 }
  0x39   : > { %1244 = vmatpush3.bf16.msra.mxu1 %v1317_v39 }
  0x3a   : > { %1245 = vmatprep.subr.bf16.mxu1 %v1319_v42 }
  0x3b   : > { %1226 = vmatpush3.bf16.msra.mxu0 %v1314_v38 }
  0x3c   : > { %1227 = vmatprep.subr.bf16.mxu0 %v1316_v41 }
  0x3d   : > { %1246 = vmatpush3.bf16.msra.mxu1 %v1319_v42 }
  0x3e   : > { %1247 = vmatprep.subr.bf16.mxu1 %v1323_v44 }
  0x3f   : > { %1228 = vmatpush3.bf16.msra.mxu0 %v1316_v41 }
  0x40   : > { %1229 = vmatprep.subr.bf16.mxu0 %v1318_v43 }
  0x41   : > { %1248 = vmatpush3.bf16.msra.mxu1 %v1323_v44  ;;  %v1122_v44 = vld [vmem:[%s1560_s2] ss:$0 sm:$0xff] }
  0x42   : > { %1249 = vmatprep.subr.bf16.mxu1 %v1325_v45 }
  0x43   : > { %1230 = vmatpush3.bf16.msra.mxu0 %v1318_v43 }
  0x44   : > { %1255 = vmatprep.subr.bf16.mxu0 %v1346_v1 }
  0x45   : > { %1250 = vmatpush3.bf16.msra.mxu1 %v1325_v45 }
  0x46   : > { %1232 = vmatmul.mubr.bf16.vlgmr.msra.gmra.mrb[4].mxu0 %v1321_v46 }
  0x47   : > { %1256 = vmatpush3.bf16.msra.mxu0 %v1322_v47  ;;  %1271 = vmatprep.mubr.msk.bf16.mxu0 %vm1347_vm0, %v1346_v1 }
  0x48   : > { %1257 = vmatprep.subr.bf16.mxu0 %v1346_v1  ;;  %1252 = vmatmul.mubr.bf16.vlgmr.msra.gmra.mrb[4].mxu1 %v651_v48 }
  0x4b   : > { %1258 = vmatpush3.bf16.msra.mxu0 %v1324_v49 }
  0x4c   : > { %1259 = vmatprep.subr.bf16.mxu0 %v1346_v1 }
  0x4f   : > { %1260 = vmatpush3.bf16.msra.mxu0 %v1328_v50 }
  0x50   : > { %1261 = vmatprep.subr.bf16.mxu0 %v1346_v1 }
  0x53   : > { %1262 = vmatpush3.bf16.msra.mxu0 %v1329_v51 }
  0x54   : > { %1263 = vmatprep.subr.bf16.mxu0 %v1346_v1 }
  0x57   : > { %1264 = vmatpush3.bf16.msra.mxu0 %v1330_v52 }
  0x58   : > { %1265 = vmatprep.subr.bf16.mxu0 %v1346_v1 }
  0x5b   : > { %1266 = vmatpush3.bf16.msra.mxu0 %v1331_v53 }
  0x5c   : > { %1267 = vmatprep.subr.bf16.mxu0 %v1346_v1 }
  0x5f   : > { %1268 = vmatpush3.bf16.msra.mxu0 %v1332_v54 }
  0x60   : > { %1269 = vmatprep.subr.bf16.mxu0 %v1346_v1 }
  0x63   : > { %1270 = vmatpush3.bf16.msra.mxu0 %v1333_v57 }
  0x66   : > { %1272 = vmatmul.mubr.bf16.vlgmr.msra.gmra.mrb[8].mxu0 %v790_v60 }
  0xf9   : > { %v326_v63 = vpop.f32.mrb[0].mxu0 }
  0xfa   : > { %v333_v2 = vadd.f32 %v326_v63, %v220_v62  ;;  %v1193_v3 = vpop.f32.mrb[1].mxu0 }
  0xfb   : > { %v329_v4 = vpop.f32.mrb[2].mxu0  ;;  %v1213_v7 = vpop.f32.mrb[0].mxu1 }
  0xfc   : > { %335 = vst [vmem:[#allocation2 + $0x3] sm:$0xff] %v333_v2  ;;  %v334_v5 = vadd.f32 %v329_v4, %v221_v0  ;;  %v1194_v6 = vpop.f32.mrb[3].mxu0  ;;  %v452_v8 = vpop.f32.mrb[1].mxu1  ;;  %v1123_v4 = vld [vmem:[%s1560_s2 + $0x1] ss:$0 sm:$0xff] }
  0xfd   : > { %v1214_v9 = vpop.f32.mrb[2].mxu1  ;;  %v1124_v6 = vld [vmem:[%s1560_s2 + $0x2] ss:$0 sm:$0xff] }
  0xfe   : > { %336 = vst [vmem:[#allocation2 + $0xb] sm:$0xff] %v334_v5  ;;  %v455_v1 = vpop.f32.mrb[3].mxu1 }
 0x103   : > { %v340_v10 = vld [vmem:[#allocation2 + $0x2] sm:$0xff] }
 0x104   : > { %v466_v11 = vadd.f32 %v452_v8, %v340_v10 }
 0x105   : > { %v342_v12 = vld [vmem:[#allocation2 + $0x12] sm:$0x1]  ;;  %v341_v13 = vld [vmem:[#allocation2 + $0xa] sm:$0xff] }
 0x106   : > { %v468_v14 = vadd.f32 %v1213_v7, %v342_v12  ;;  %469 = vst [vmem:[#allocation2 + $0x2] sm:$0xff] %v466_v11  ;;  %v467_v15 = vadd.f32 %v455_v1, %v341_v13 }
 0x108   : > { %471 = vst [vmem:[#allocation2 + $0x12] sm:$0x1] %v468_v14  ;;  %470 = vst [vmem:[#allocation2 + $0xa] sm:$0xff] %v467_v15 }
 0x10d   : > { %v475_v19 = vld [vmem:[#allocation2 + $0x1] sm:$0xff] }
 0x10f   : > { %v477_v16 = vld [vmem:[#allocation2 + $0x11] sm:$0x3]  ;;  %v476_v23 = vld [vmem:[#allocation2 + $0x9] sm:$0xff] }
 0x119   : > { %v1233_v17 = vpop.f32.mrb[4].mxu0 }
 0x11a   : > { %v603_v18 = vadd.f32 %v1233_v17, %v477_v16  ;;  %v587_v20 = vpop.f32.mrb[5].mxu0 }
 0x11b   : > { %v601_v21 = vadd.f32 %v587_v20, %v475_v19  ;;  %v1234_v22 = vpop.f32.mrb[6].mxu0  ;;  %v1253_v26 = vpop.f32.mrb[4].mxu1 }
 0x11c   : > { %606 = vst [vmem:[#allocation2 + $0x11] sm:$0x3] %v603_v18  ;;  %v590_v24 = vpop.f32.mrb[7].mxu0  ;;  %v737_v27 = vpop.f32.mrb[5].mxu1 }
 0x11d   : > { %v602_v25 = vadd.f32 %v590_v24, %v476_v23  ;;  %v751_v28 = vadd.f32 %v737_v27, %v601_v21  ;;  %v1254_v29 = vpop.f32.mrb[6].mxu1 }
 0x11e   : > { %v740_v30 = vpop.f32.mrb[7].mxu1 }
 0x11f   : > { %v752_v31 = vadd.f32 %v740_v30, %v602_v25 }
 0x123   : > { %v612_v32 = vld [vmem:[#allocation2 + $0x11] sm:$0x1] }
 0x124   : > { %v753_v33 = vadd.f32 %v1253_v26, %v612_v32 }
 0x126   : > { %756 = vst [vmem:[#allocation2 + $0x11] sm:$0x1] %v753_v33 }
 0x139   : > { %v874_v34 = vpop.f32.mrb[8].mxu0 }
 0x13a   : > { %v881_v35 = vadd.f32 %v874_v34, %v751_v28  ;;  %v1273_v36 = vpop.f32.mrb[9].mxu0 }
 0x13b   : > { %v877_v37 = vpop.f32.mrb[10].mxu0 }
 0x13c   : > { %883 = vst [vmem:[#allocation2 + $0x1] sm:$0xff] %v881_v35  ;;  %v882_v38 = vadd.f32 %v877_v37, %v752_v31  ;;  %v1274_v39 = vpop.f32.mrb[11].mxu0 }
 0x13e   : > { %884 = vst [vmem:[#allocation2 + $0x9] sm:$0xff] %v882_v38 }
 0x145   : > { %v885_v40 = vld [vmem:[#allocation2] ss:$3 sm:$0x3f]  ;;  %v887_v41 = vld [vmem:[#allocation2 + $0x1] ss:$3 sm:$0x3f] }
 0x146   : > { %v890_v42 = vmax.f32 %v885_v40, %v887_v41  ;;  %v889_v43 = vld [vmem:[#allocation2 + $0x2] ss:$3 sm:$0x3f] }
 0x148   : > { %v891_v45 = vmax.f32 %v890_v42, %v889_v43 }
 0x14a   : > { %v897_v46 = vadd.f32 %v1122_v44, %v891_v45 }
 0x14c   : > { %v899_v47 = vsel %vm898_vm3, %v897_v46, 0.0 }
 0x14d   : > { %v900_v48 = vrot.slane %v899_v47, 4 }
 0x14f   : > { %v901_v49 = vadd.f32 %v900_v48, %v899_v47 }
 0x151   : > { %v902_v50 = vrot.slane %v901_v49, 2 }
 0x153   : > { %v903_v51 = vadd.f32 %v902_v50, %v901_v49 }
 0x155   : > { %v904_v52 = vrot.slane %v903_v51, 1 }
 0x157   : > { %v905_v53 = vadd.f32 %v904_v52, %v903_v51 }
 0x159   : > { %v907_v54 = vmul.f32 0.16666667, %v905_v53 }
 0x15b   : > { %v908_v55 = vsub.f32 %v897_v46, %v907_v54 }
 0x15d   : > { %v909_v56 = vmul.f32 %v908_v55, %v908_v55 }
 0x15f   : > { %v910_v57 = vsel %vm898_vm3, %v909_v56, 0.0 }
 0x160   : > { %v911_v58 = vrot.slane %v910_v57, 4 }
 0x162   : > { %v912_v59 = vadd.f32 %v911_v58, %v910_v57 }
 0x164   : > { %v913_v60 = vrot.slane %v912_v59, 2 }
 0x166   : > { %v914_v61 = vadd.f32 %v913_v60, %v912_v59 }
 0x168   : > { %v915_v62 = vrot.slane %v914_v61, 1 }
 0x16a   : > { %v916_v63 = vadd.f32 %v915_v62, %v914_v61 }
 0x16c   : > { %v917_v0 = vmul.f32 0.16666667, %v916_v63 }
 0x16e   : > { %v918_v2 = vadd.f32 1e-05, %v917_v0 }
 0x170   : > { %1336 = vrsqrt.f32 %v918_v2 }
 0x17a   : > { %v1337_v3 = vpop.eup %1336 }
 0x17b   : > { %v920_v5 = vmul.f32 %v1337_v3, %v908_v55 }
 0x17d   : > { %v926_v7 = vmul.f32 %v1123_v4, %v920_v5 }
 0x17f   : > { %v932_v8 = vadd.f32 %v1124_v6, %v926_v7 }
 0x181   : > { %vm933_vm4 = vcmp.ge.f32.partialorder %v932_v8, 0.0  ;;  %v934_v9 = vmul.f32 0.2, %v932_v8 }
 0x183   : > { %v935_v1 = vsel %vm933_vm4, %v932_v8, %v934_v9 }
 0x184   : > { %936 = vst [vmem:[%s212_s10] sm:$0x3f] %v935_v1 }
 0x185 PF: > { %s14_s15 = sadd.s32 1, %s1344_s15  }
 0x186   : > { %p11_p4 = scmp.ge.s32.totalorder %s14_s15, 4  }
 0x188   :  { %13 = sbr.rel (!%p11_p4) target bundleno = 1 (0x1), region = 75 }

// kernel: sincnet_forward.4
= control target key start
LH: loop header
LB: loop body
LE: loop exit
PB: predicated region body
PF: predicated region fallthrough
CT: control target
= control target key end

     0   :  { %s1974_s15 = smov 0   ;;  %s2207_s0 = inlined_call_operand.vmem [shape: bf16[2,64,128], index: 0, kind: input, shape index: {}]   ;;  %s2208_s1 = inlined_call_operand.vmem [shape: bf16[5,128,128], index: 1, kind: input, shape index: {}]   ;;  %s2209_s2 = inlined_call_operand.vmem [shape: f32[8,128], index: 2, kind: input, shape index: {}]   ;;  %s2210_s3 = inlined_call_operand.vmem [shape: f32[2,2,128], index: 3, kind: input, shape index: {}]   ;;  %s2211_s4 = inlined_call_operand.vmem [shape: bf16[2,18,128], index: 4, kind: output, shape index: {}]  }
   0x1 LB: > { %s1472_s16 = sadd.s32 4294967295, %s1945_s15   ;;  %p1476_p0 = scmp.ge.s32.totalorder %s1945_s15, 1  ;;  %s1945_s15 = sphi %s1974_s15, %s14_s15  }
   0x2   : > { %p171_p1 = scmp.lt.s32.totalorder %s1945_s15, 3 }
   0x4   : > { %p172_p2 = pnand %p1476_p0, %p171_p1 }
   0x5   : > { %v1897_v0 = vld [vmem:[%s2208_s1] sm:$0xff] (!%p172_p2)   ;;  %v1899_v2 = vld [vmem:[%s2208_s1 + $0x8] sm:$0xff] (!%p172_p2)   ;;  %p1991_p3 = scmp.lt.s32.totalorder (!%p172_p2), %s1472_s16, 1  ;;  %v1901_v4 = vld [vmem:[%s2208_s1 + $0x10] sm:$0xff] (!%p172_p2)   ;;  %v1947_v5 = vmov (!%p172_p2), 0.0   ;;  %vm1162_vm14 = vcmask (!%p172_p2), 1046528  }
   0x6   : > { %175 = sbr.rel (%p172_p2) target bundleno = 404 (0x194), region = 36  ;;  %v1898_v1 = vld [vmem:[%s2208_s1 + $0x80] sm:$0xff] (!%p172_p2)   ;;  %1730 = vmatprep.subr.bf16.mxu1 (!%p172_p2), %v1897_v0  ;;  %v1900_v3 = vld [vmem:[%s2208_s1 + $0x88] sm:$0xff] (!%p172_p2)   ;;  %219 = vst [vmem:[#allocation2 + $0x11] sm:$0xff] (!%p172_p2), %v1947_v5  ;;  %220 = vst [vmem:[#allocation2 + $0x19] sm:$0xff] (!%p172_p2), %v1947_v5  ;;  %vm1332_vm15 = vcmask (!%p172_p2), 1041408  }
   0x7   : > { %1778 = vmatprep.subr.bf16.mxu0 (!%p172_p2), %v1898_v1  ;;  %1731 = vmatpush3.bf16.msra.mxu1 (!%p172_p2), %v1897_v0  ;;  %217 = vst [vmem:[#allocation2 + $0x1] sm:$0xff] (!%p172_p2), %v1947_v5  ;;  %218 = vst [vmem:[#allocation2 + $0x9] sm:$0xff] (!%p172_p2), %v1947_v5  ;;  %v1902_v6 = vld [vmem:[%s2208_s1 + $0x90] sm:$0xff] (!%p172_p2)   ;;  %v1903_v7 = vld [vmem:[%s2208_s1 + $0x18] sm:$0xff] (!%p172_p2)   ;;  %vm919_vm7 = vsmask.f32 (!%p172_p2), 7424 }
   0x8   : > { %1779 = vmatpush3.bf16.msra.mxu0 (!%p172_p2), %v1898_v1  ;;  %1732 = vmatprep.subr.bf16.mxu1 (!%p172_p2), %v1899_v2  ;;  %221 = vst [vmem:[#allocation2 + $0x21] sm:$0xff] (!%p172_p2), %v1947_v5  ;;  %222 = vst [vmem:[#allocation2 + $0x29] sm:$0xff] (!%p172_p2), %v1947_v5  ;;  %v1904_v8 = vld [vmem:[%s2208_s1 + $0x98] sm:$0xff] (!%p172_p2)   ;;  %v1905_v9 = vld [vmem:[%s2208_s1 + $0x20] sm:$0xff] (!%p172_p2)  }
   0x9   : > { %223 = vst [vmem:[#allocation2 + $0x31] sm:$0x3f] (!%p172_p2), %v1947_v5  ;;  %1780 = vmatprep.subr.bf16.mxu0 (!%p172_p2), %v1900_v3  ;;  %v1906_v10 = vld [vmem:[%s2208_s1 + $0xa0] sm:$0xff] (!%p172_p2)   ;;  %v1907_v11 = vld [vmem:[%s2208_s1 + $0x28] sm:$0xff] (!%p172_p2)   ;;  %v1909_v23 = vld [vmem:[%s2208_s1 + $0x30] sm:$0xff] (!%p172_p2)  }
   0xa   : > { %v1908_v12 = vld [vmem:[%s2208_s1 + $0xa8] sm:$0xff] (!%p172_p2)   ;;  %v1910_v26 = vld [vmem:[%s2208_s1 + $0xb0] sm:$0xff] (!%p172_p2)   ;;  %v1911_v30 = vld [vmem:[%s2208_s1 + $0x38] sm:$0xff] (!%p172_p2)  }
   0xb   : > { %1733 = vmatpush3.bf16.msra.mxu1 (!%p172_p2), %v1899_v2  ;;  %v1912_v40 = vld [vmem:[%s2208_s1 + $0xb8] sm:$0xff] (!%p172_p2)   ;;  %v1913_v49 = vld [vmem:[%s2208_s1 + $0x40] sm:$0xff] (!%p172_p2)   ;;  %v1915_v58 = vld [vmem:[%s2208_s1 + $0x48] sm:$0xff] (!%p172_p2)  }
   0xc   : > { %1781 = vmatpush3.bf16.msra.mxu0 (!%p172_p2), %v1900_v3  ;;  %1734 = vmatprep.subr.bf16.mxu1 (!%p172_p2), %v1901_v4  ;;  %v1914_v52 = vld [vmem:[%s2208_s1 + $0xc0] sm:$0xff] (!%p172_p2)   ;;  %v1916_v61 = vld [vmem:[%s2208_s1 + $0xc8] sm:$0xff] (!%p172_p2)   ;;  %v1917_v3 = vld [vmem:[%s2208_s1 + $0x50] sm:$0xff] (!%p172_p2)  }
   0xd   : > { %s2214_s16 = smov (!%p1991_p3, %s1472_s16), 1  ;;  %1782 = vmatprep.subr.bf16.mxu0 %v1902_v6  ;;  %v1918_v5 = vld [vmem:[%s2208_s1 + $0xd0] sm:$0xff]  }
   0xe   : > { %s1595_s8 = sshll.u32 %s2214_s16, 5  ;;  %s1479_s9 = sshll.u32 %s2214_s16, 1 }
   0xf   : > { %1735 = vmatpush3.bf16.msra.mxu1 %v1901_v4  ;;  %s2025_s18 = scalar_lea.vmem %s2207_s0, %s1595_s8  ;;  %s209_s21 = scalar_lea.vmem %s2210_s3, %s1479_s9 }
  0x10   : > { %1783 = vmatpush3.bf16.msra.mxu0 %v1902_v6  ;;  %1736 = vmatprep.subr.bf16.mxu1 %v1903_v7  ;;  %v2036_v13 = vld [vmem:[%s209_s21] ss:$0 sm:$0xff]  ;;  %v1660_v17 = vld [vmem:[%s2025_s18 + $0x8] sm:$0xff]   ;;  %v2040_v18 = vld [vmem:[%s209_s21 + $0x1] ss:$0 sm:$0xff]  ;;  %s1886_s14 = smul.u32 12, %s2214_s16 }
  0x11   : > { %1784 = vmatprep.subr.bf16.mxu0 %v1904_v8  ;;  %v1600_v14 = vld [vmem:[%s2025_s18] sm:$0xff]   ;;  %v1605_v19 = vunpack.c.l.bf16 %v1660_v17  ;;  %v1606_v20 = vunpack.c.h.bf16 %v1660_v17  ;;  %v1661_v29 = vld [vmem:[%s2025_s18 + $0x10] sm:$0xff]   ;;  %v232_v35 = vld [vmem:[%s2025_s18 + $0x18] sm:$0x3] }
  0x12   : > { %v1601_v15 = vunpack.c.l.bf16 %v1600_v14  ;;  %v1602_v16 = vunpack.c.h.bf16 %v1600_v14  ;;  %v1609_v33 = vunpack.c.l.bf16 %v1661_v29  ;;  %v1610_v34 = vunpack.c.h.bf16 %v1661_v29  ;;  %v645_v2 = vld [vmem:[%s2025_s18 + $0x18] sm:$0x7]  ;;  %v1082_v29 = vld [vmem:[%s2025_s18 + $0x4] sm:$0xf]  ;;  %s214_s20 = scalar_lea.vmem %s2211_s4, %s1886_s14 }
  0x13   : > { %1737 = vmatpush3.bf16.msra.mxu1 %v1903_v7  ;;  %v246_v24 = vmul.f32 %v1605_v19, %v2036_v13  ;;  %v247_v25 = vmul.f32 %v1606_v20, %v2036_v13  ;;  %v239_v46 = vunpack.c.l.bf16 %v232_v35  ;;  %v652_v4 = vunpack.c.l.bf16 %v645_v2  ;;  %v1920_v14 = vld [vmem:[%s2208_s1 + $0xd8] sm:$0xff]   ;;  %v1921_v19 = vld [vmem:[%s2208_s1 + $0x60] sm:$0xff]   ;;  %v1924_v35 = vld [vmem:[%s2208_s1 + $0xe8] sm:$0xff]  }
  0x14   : > { %1785 = vmatpush3.bf16.msra.mxu0 %v1904_v8  ;;  %1738 = vmatprep.subr.bf16.mxu1 %v1905_v9  ;;  %v244_v21 = vmul.f32 %v1601_v15, %v2036_v13  ;;  %v245_v22 = vmul.f32 %v1602_v16, %v2036_v13  ;;  %v248_v43 = vmul.f32 %v1609_v33, %v2036_v13  ;;  %v1089_v33 = vunpack.c.l.bf16 %v1082_v29  ;;  %v287_v29 = vld [vmem:[#allocation2 + $0x3] sm:$0xff] }
  0x15   : > { %1786 = vmatprep.subr.bf16.mxu0 %v1906_v10  ;;  %v257_v31 = vadd.f32 %v2040_v18, %v246_v24  ;;  %v258_v32 = vadd.f32 %v2040_v18, %v247_v25  ;;  %v249_v44 = vmul.f32 %v1610_v34, %v2036_v13  ;;  %v250_v53 = vmul.f32 %v2036_v13, %v239_v46 }
  0x16   : > { %v255_v27 = vadd.f32 %v2040_v18, %v244_v21  ;;  %v256_v28 = vadd.f32 %v2040_v18, %v245_v22  ;;  %v259_v50 = vadd.f32 %v2040_v18, %v248_v43  ;;  %v659_v8 = vmul.f32 %v2036_v13, %v652_v4  ;;  %v848_v21 = vld [vmem:[%s2025_s18 + $0x18] sm:$0x7]  ;;  %v1922_v22 = vld [vmem:[%s2208_s1 + $0xe0] sm:$0xff]   ;;  %v1926_v43 = vld [vmem:[%s2208_s1 + $0xf0] sm:$0xff]  }
  0x17   : > { %1739 = vmatpush3.bf16.msra.mxu1 %v1905_v9  ;;  %vm264_vm2 = vcmp.ge.f32.partialorder %v257_v31, 0.0  ;;  %vm265_vm3 = vcmp.ge.f32.partialorder %v258_v32, 0.0  ;;  %v271_v38 = vmul.f32 0.2, %v257_v31  ;;  %v272_v39 = vmul.f32 0.2, %v258_v32 }
  0x18   : > { %1787 = vmatpush3.bf16.msra.mxu0 %v1906_v10  ;;  %1740 = vmatprep.subr.bf16.mxu1 %v1907_v11  ;;  %vm262_vm0 = vcmp.ge.f32.partialorder %v255_v27, 0.0  ;;  %vm263_vm1 = vcmp.ge.f32.partialorder %v256_v28, 0.0  ;;  %v269_v36 = vmul.f32 0.2, %v255_v27  ;;  %v270_v37 = vmul.f32 0.2, %v256_v28 }
  0x19   : > { %1788 = vmatprep.subr.bf16.mxu0 %v1908_v12  ;;  %v278_v47 = vsel %vm264_vm2, %v257_v31, %v271_v38  ;;  %v279_v48 = vsel %vm265_vm3, %v258_v32, %v272_v39  ;;  %v260_v51 = vadd.f32 %v2040_v18, %v249_v44  ;;  %vm266_vm4 = vcmp.ge.f32.partialorder %v259_v50, 0.0  ;;  %v1923_v31 = vld [vmem:[%s2208_s1 + $0x68] sm:$0xff]  }
  0x1a   : > { %v276_v41 = vsel %vm262_vm0, %v255_v27, %v269_v36  ;;  %v277_v42 = vsel %vm263_vm1, %v256_v28, %v270_v37  ;;  %v273_v54 = vmul.f32 0.2, %v259_v50  ;;  %v2078_v56 = vpack.c.bf16 %v279_v48, %v278_v47  ;;  %v1081_v28 = vld [vmem:[%s2025_s18] sm:$0xe] }
  0x1b   : > { %1741 = vmatpush3.bf16.msra.mxu1 %v1907_v11  ;;  %v2066_v45 = vpack.c.bf16 %v277_v42, %v276_v41  ;;  %vm267_vm5 = vcmp.ge.f32.partialorder %v260_v51, 0.0  ;;  %v274_v55 = vmul.f32 0.2, %v260_v51  ;;  %v261_v57 = vadd.f32 %v2040_v18, %v250_v53  ;;  %v1919_v11 = vld [vmem:[%s2208_s1 + $0x58] sm:$0xff]   ;;  %v1925_v41 = vld [vmem:[%s2208_s1 + $0x70] sm:$0xff]  }
  0x1c   : > { %1789 = vmatpush3.bf16.msra.mxu0 %v1908_v12  ;;  %1742 = vmatprep.subr.bf16.mxu1 %v1909_v23  ;;  %v280_v59 = vsel %vm266_vm4, %v259_v50, %v273_v54  ;;  %v928_v10 = vshll.u32 %v2078_v56, 16  ;;  %v666_v12 = vadd.f32 %v2040_v18, %v659_v8  ;;  %v855_v24 = vunpack.c.l.bf16 %v848_v21  ;;  %v1927_v50 = vld [vmem:[%s2208_s1 + $0x78] sm:$0xff]  }
  0x1d   : > { %1790 = vmatprep.subr.bf16.mxu0 %v1910_v26  ;;  %1746 = vmatprep.mubr.bf16.mxu1 %v2066_v45  ;;  %v281_v60 = vsel %vm267_vm5, %v260_v51, %v274_v55  ;;  %vm268_vm6 = vcmp.ge.f32.partialorder %v261_v57, 0.0  ;;  %v275_v62 = vmul.f32 0.2, %v261_v57  ;;  %v923_v0 = vshll.u32 %v2066_v45, 16  ;;  %v1932_v21 = vld [vmem:[%s2208_s1 + $0x118] sm:$0xff]  }
  0x1e   : > { %1794 = vmatprep.mubr.bf16.mxu0 %v2066_v45  ;;  %v2088_v63 = vpack.c.bf16 %v281_v60, %v280_v59  ;;  %v921_v6 = vshrl.u32 %v2066_v45, 16  ;;  %vm673_vm8 = vcmp.ge.f32.partialorder %v666_v12, 0.0  ;;  %v680_v15 = vmul.f32 0.2, %v666_v12  ;;  %v1929_v60 = vld [vmem:[%s2208_s1 + $0x100] sm:$0xff]  }
  0x1f   : > { %1743 = vmatpush3.bf16.msra.mxu1 %v1909_v23  ;;  %v282_v1 = vsel %vm268_vm6, %v261_v57, %v275_v62  ;;  %v925_v9 = vrot.slane %v923_v0, 1  ;;  %v930_v17 = vrot.slane %v928_v10, 1  ;;  %v862_v27 = vmul.f32 %v2036_v13, %v855_v24  ;;  %v1935_v24 = vld [vmem:[%s2208_s1 + $0x130] sm:$0xff]  }
  0x20   : > { %1791 = vmatpush3.bf16.msra.mxu0 %v1910_v26  ;;  %1744 = vmatprep.subr.bf16.mxu1 %v1911_v30  ;;  %v286_v7 = vpack.c.bf16 %v282_v1, %v282_v1  ;;  %v687_v20 = vsel %vm673_vm8, %v666_v12, %v680_v15  ;;  %v442_v26 = vld [vmem:[%s2025_s18 + $0x18] sm:$0x7]  ;;  %v1088_v32 = vunpack.c.l.bf16 %v1081_v28  ;;  %v936_v51 = vshll.u32 %v2088_v63, 16  ;;  %v1931_v12 = vld [vmem:[%s2208_s1 + $0x110] sm:$0xff]  }
  0x21   : > { %1792 = vmatprep.subr.bf16.mxu0 %v1912_v40  ;;  %v926_v16 = vor.u32 %v925_v9, %v921_v6  ;;  %v691_v23 = vpack.c.bf16 %v687_v20, %v687_v20  ;;  %v869_v36 = vadd.f32 %v2040_v18, %v862_v27  ;;  %v449_v37 = vunpack.c.l.bf16 %v442_v26  ;;  %v1930_v6 = vld [vmem:[%s2208_s1 + $0x108] sm:$0xff]   ;;  %v289_v28 = vld [vmem:[#allocation2 + $0x13] sm:$0xff] }
  0x22   : > { %v1095_v39 = vmul.f32 %v2036_v13, %v1088_v32  ;;  %v940_v54 = vshrl.u32 %v2088_v63, 16  ;;  %v1948_v27 = vmov -3e+38  }
  0x23   : > { %1745 = vmatpush3.bf16.msra.mxu1 %v1911_v30  ;;  %v931_v25 = vsel %vm919_vm7, %v926_v16, %v930_v17  ;;  %v1087_v30 = vld [vmem:[%s2025_s18 + $0x18] sm:$0x7]  ;;  %vm876_vm9 = vcmp.ge.f32.partialorder %v869_v36, 0.0  ;;  %v883_v38 = vmul.f32 0.2, %v869_v36  ;;  %v456_v46 = vmul.f32 %v2036_v13, %v449_v37 }
  0x24   : > { %1793 = vmatpush3.bf16.msra.mxu0 %v1912_v40  ;;  %1754 = vmatprep.subr.bf16.mxu1 %v1913_v49  ;;  %v1094_v34 = vunpack.c.l.bf16 %v1087_v30  ;;  %v1096_v40 = vmul.f32 %v2036_v13, %v1089_v33  ;;  %v1102_v48 = vadd.f32 %v2040_v18, %v1095_v39  ;;  %v1164_v16 = vrot.slane %v2078_v56, 1  ;;  %216 = vst [vmem:[#allocation2] sm:$0x1] %v1948_v27 }
  0x25   : > { %1802 = vmatprep.subr.bf16.mxu0 %v1914_v52  ;;  %v890_v44 = vsel %vm876_vm9, %v869_v36, %v883_v38  ;;  %v463_v55 = vadd.f32 %v2040_v18, %v456_v46 }
  0x26   : > { %1747 = vmatmul.mubr.bf16.vlgmr.msra.gmra.mrb[0].mxu1 %v2078_v56  ;;  %v1101_v42 = vmul.f32 %v2036_v13, %v1094_v34  ;;  %v894_v47 = vpack.c.bf16 %v890_v44, %v890_v44  ;;  %v1928_v13 = vld [vmem:[%s2208_s1 + $0xf8] sm:$0xff]   ;;  %vm1109_vm10 = vcmp.ge.f32.partialorder %v1102_v48, 0.0  ;;  %v288_v34 = vld [vmem:[#allocation2 + $0xb] sm:$0xff] }
  0x27   : > { %1755 = vmatpush3.bf16.msra.mxu1 %v1913_v49  ;;  %1795 = vmatmul.mubr.bf16.vlgmr.msra.gmra.mrb[0].mxu0 %v2078_v56  ;;  %v1103_v49 = vadd.f32 %v2040_v18, %v1096_v40  ;;  %v477_v1 = vmul.f32 0.2, %v463_v55  ;;  %vm470_vm13 = vcmp.ge.f32.partialorder %v463_v55, 0.0  ;;  %v293_v40 = vld [vmem:[#allocation2 + $0x33] sm:$0xf] }
  0x28   : > { %1803 = vmatpush3.bf16.msra.mxu0 %v1914_v52  ;;  %1756 = vmatprep.subr.bf16.mxu1 %v1915_v58  ;;  %v1108_v52 = vadd.f32 %v2040_v18, %v1101_v42  ;;  %v944_v57 = vshll.u32 %v894_v47, 16  ;;  %v948_v10 = vshrl.u32 %v894_v47, 16 }
  0x29   : > { %1804 = vmatprep.subr.bf16.mxu0 %v1916_v61  ;;  %1750 = vmatprep.mubr.bf16.mxu1 %v2088_v63  ;;  %v1117_v59 = vmul.f32 0.2, %v1103_v49  ;;  %vm1110_vm11 = vcmp.ge.f32.partialorder %v1103_v49, 0.0  ;;  %v484_v8 = vsel %vm470_vm13, %v463_v55, %v477_v1 }
  0x2a   : > { %1798 = vmatprep.mubr.bf16.mxu0 %v2088_v63  ;;  %v1122_v62 = vmul.f32 0.2, %v1108_v52  ;;  %vm1115_vm12 = vcmp.ge.f32.partialorder %v1108_v52, 0.0  ;;  %v946_v2 = vrot.slane %v944_v57, 1 }
  0x2b   : > { %1757 = vmatpush3.bf16.msra.mxu1 %v1915_v58  ;;  %v1116_v58 = vmul.f32 0.2, %v1102_v48 }
  0x2c   : > { %1805 = vmatpush3.bf16.msra.mxu0 %v1916_v61  ;;  %1758 = vmatprep.subr.bf16.mxu1 %v1917_v3  ;;  %v938_v61 = vrot.slane %v936_v51, 1 }
  0x2d   : > { %1806 = vmatprep.subr.bf16.mxu0 %v1918_v5  ;;  %v1123_v18 = vsel %vm1109_vm10, %v1102_v48, %v1116_v58 }
  0x2e   : > { %1751 = vmatmul.mubr.bf16.gmra.mrb[4].mxu1 %v286_v7  ;;  %v942_v0 = vor.u32 %v940_v54, %v938_v61 }
  0x2f   : > { %1759 = vmatpush3.bf16.msra.mxu1 %v1917_v3  ;;  %1770 = vmatprep.mubr.bf16.mxu1 %v2066_v45  ;;  %v932_v45 = vshrl.u32 %v2078_v56, 16  ;;  %v1124_v3 = vsel %vm1110_vm11, %v1103_v49, %v1117_v59 }
  0x30   : > { %1807 = vmatpush3.bf16.msra.mxu0 %v1918_v5  ;;  %1760 = vmatprep.subr.bf16.mxu1 %v1919_v11  ;;  %v1129_v5 = vsel %vm1115_vm12, %v1108_v52, %v1122_v62  ;;  %v1130_v7 = vpack.c.bf16 %v1124_v3, %v1123_v18  ;;  %v947_v9 = vsel %vm919_vm7, %v942_v0, %v946_v2 }
  0x31   : > { %1808 = vmatprep.subr.bf16.mxu0 %v1920_v14  ;;  %1799 = vmatmul.mubr.bf16.gmra.mrb[4].mxu0 %v691_v23  ;;  %v934_v53 = vor.u32 %v932_v45, %v930_v17  ;;  %v950_v17 = vor.u32 %v948_v10, %v946_v2  ;;  %v1934_v23 = vld [vmem:[%s2208_s1 + $0x128] sm:$0xff]  }
  0x32   : > { %1818 = vmatprep.mubr.bf16.mxu0 %v931_v25  ;;  %v1163_v15 = vrot.slane %v1130_v7, 1  ;;  %v1936_v25 = vld [vmem:[%s2208_s1 + $0x138] sm:$0xff]   ;;  %v292_v45 = vld [vmem:[#allocation2 + $0x2b] sm:$0xff] }
  0x33   : > { %1761 = vmatpush3.bf16.msra.mxu1 %v1919_v11  ;;  %v939_v4 = vsel %vm919_vm7, %v934_v53, %v938_v61  ;;  %v1133_v11 = vpack.c.bf16 %v1129_v5, %v1129_v5 }
  0x34   : > { %1809 = vmatpush3.bf16.msra.mxu0 %v1920_v14  ;;  %1762 = vmatprep.subr.bf16.mxu1 %v1921_v19  ;;  %v488_v14 = vpack.c.bf16 %v484_v8, %v484_v8 }
  0x35   : > { %1810 = vmatprep.subr.bf16.mxu0 %v1922_v22  ;;  %v1168_v20 = vrot.slane %v1133_v11, 1 }
  0x37   : > { %1763 = vmatpush3.bf16.msra.mxu1 %v1921_v19  ;;  %v1166_v19 = vrot.slane %v2088_v63, 1 }
  0x38   : > { %1811 = vmatpush3.bf16.msra.mxu0 %v1922_v22  ;;  %1764 = vmatprep.subr.bf16.mxu1 %v1923_v31  ;;  %v1165_v22 = vsel %vm1162_vm14, %v1163_v15, %v1164_v16 }
  0x39   : > { %1812 = vmatprep.subr.bf16.mxu0 %v1924_v35  ;;  %v1167_v26 = vsel %vm1162_vm14, %v1164_v16, %v1166_v19 }
  0x3b   : > { %1765 = vmatpush3.bf16.msra.mxu1 %v1923_v31  ;;  %v290_v31 = vld [vmem:[#allocation2 + $0x1b] sm:$0xff] }
  0x3c   : > { %1813 = vmatpush3.bf16.msra.mxu0 %v1924_v35  ;;  %1766 = vmatprep.subr.bf16.mxu1 %v1925_v41 }
  0x3d   : > { %1814 = vmatprep.subr.bf16.mxu0 %v1926_v43 }
  0x3f   : > { %1767 = vmatpush3.bf16.msra.mxu1 %v1925_v41  ;;  %v291_v41 = vld [vmem:[#allocation2 + $0x23] sm:$0xff] }
  0x40   : > { %1815 = vmatpush3.bf16.msra.mxu0 %v1926_v43  ;;  %1768 = vmatprep.subr.bf16.mxu1 %v1927_v50 }
  0x41   : > { %1816 = vmatprep.subr.bf16.mxu0 %v1928_v13 }
  0x43   : > { %1769 = vmatpush3.bf16.msra.mxu1 %v1927_v50 }
  0x44   : > { %1817 = vmatpush3.bf16.msra.mxu0 %v1928_v13  ;;  %1850 = vmatprep.subr.bf16.mxu1 %v1929_v60 }
  0x45   : > { %1826 = vmatprep.subr.bf16.mxu0 %v1929_v60 }
  0x46   : > { %1771 = vmatmul.mubr.bf16.vlgmr.msra.gmra.mrb[8].mxu1 %v2078_v56  ;;  %v1169_v56 = vsel %vm1162_vm14, %v1166_v19, %v1168_v20 }
  0x47   : > { %1819 = vmatmul.mubr.bf16.vlgmr.msra.gmra.mrb[0].mxu0 %v939_v4  ;;  %1858 = vmatpush3.bf16.msra.mxu1 %v1929_v60 }
  0x48   : > { %1827 = vmatpush3.bf16.msra.mxu0 %v1929_v60  ;;  %1774 = vmatprep.mubr.bf16.mxu1 %v2088_v63  ;;  %v1933_v63 = vld [vmem:[%s2208_s1 + $0x120] sm:$0xff]  }
  0x49   : > { %1828 = vmatprep.subr.bf16.mxu0 %v1930_v6  ;;  %1851 = vmatprep.subr.bf16.mxu1 %v1930_v6 }
  0x4a   : > { %1822 = vmatprep.mubr.bf16.mxu0 %v947_v9 }
  0x4b   : > { %1859 = vmatpush3.bf16.msra.mxu1 %v1930_v6 }
  0x4c   : > { %1829 = vmatpush3.bf16.msra.mxu0 %v1930_v6  ;;  %1852 = vmatprep.subr.bf16.mxu1 %v1931_v12 }
  0x4d   : > { %1830 = vmatprep.subr.bf16.mxu0 %v1931_v12 }
  0x4e   : > { %1775 = vmatmul.mubr.bf16.gmra.mrb[12].mxu1 %v488_v14 }
  0x4f   : > { %1860 = vmatpush3.bf16.msra.mxu1 %v1931_v12  ;;  %1823 = vmatmul.mubr.bf16.gmra.mrb[8].mxu0 %v950_v17 }
  0x50   : > { %1831 = vmatpush3.bf16.msra.mxu0 %v1931_v12  ;;  %1853 = vmatprep.subr.bf16.mxu1 %v1932_v21 }
  0x51   : > { %1832 = vmatprep.subr.bf16.mxu0 %v1932_v21  ;;  %1842 = vmatprep.mubr.bf16.mxu0 %v1165_v22 }
  0x52   : > { %1846 = vmatprep.mubr.bf16.mxu1 %v1169_v56 }
  0x53   : > { %1861 = vmatpush3.bf16.msra.mxu1 %v1932_v21 }
  0x54   : > { %1833 = vmatpush3.bf16.msra.mxu0 %v1932_v21  ;;  %1854 = vmatprep.subr.bf16.mxu1 %v1933_v63 }
  0x55   : > { %1834 = vmatprep.subr.bf16.mxu0 %v1933_v63 }
  0x57   : > { %1862 = vmatpush3.bf16.msra.mxu1 %v1933_v63 }
  0x58   : > { %1835 = vmatpush3.bf16.msra.mxu0 %v1933_v63  ;;  %1855 = vmatprep.subr.bf16.mxu1 %v1934_v23 }
  0x59   : > { %1836 = vmatprep.subr.bf16.mxu0 %v1934_v23 }
  0x5b   : > { %1863 = vmatpush3.bf16.msra.mxu1 %v1934_v23 }
  0x5c   : > { %1837 = vmatpush3.bf16.msra.mxu0 %v1934_v23  ;;  %1856 = vmatprep.subr.bf16.mxu1 %v1935_v24 }
  0x5d   : > { %1838 = vmatprep.subr.bf16.mxu0 %v1935_v24 }
  0x5f   : > { %1864 = vmatpush3.bf16.msra.mxu1 %v1935_v24 }
  0x60   : > { %1839 = vmatpush3.bf16.msra.mxu0 %v1935_v24  ;;  %1857 = vmatprep.subr.bf16.mxu1 %v1936_v25 }
  0x61   : > { %1840 = vmatprep.subr.bf16.mxu0 %v1936_v25 }
  0x63   : > { %1865 = vmatpush3.bf16.msra.mxu1 %v1936_v25 }
  0x64   : > { %1841 = vmatpush3.bf16.msra.mxu0 %v1936_v25 }
  0x66   : > { %1847 = vmatmul.mubr.bf16.vlgmr.msra.gmra.mrb[16].mxu1 %v1168_v20 }
  0x67   : > { %1843 = vmatmul.mubr.bf16.vlgmr.msra.gmra.mrb[0].mxu0 %v1167_v26 }
  0xf9   : > { %v1748_v30 = vpop.f32.mrb[0].mxu1 }
  0xfa   : > { %v424_v32 = vadd.f32 %v1748_v30, %v289_v28  ;;  %v392_v33 = vpop.f32.mrb[1].mxu1 }
  0xfb   : > { %v422_v35 = vadd.f32 %v392_v33, %v287_v29  ;;  %v1749_v36 = vpop.f32.mrb[2].mxu1 }
  0xfc   : > { %431 = vst [vmem:[#allocation2 + $0x13] sm:$0xff] %v424_v32  ;;  %v425_v37 = vadd.f32 %v1749_v36, %v290_v31  ;;  %v395_v38 = vpop.f32.mrb[3].mxu1 }
  0xfd   : > { %429 = vst [vmem:[#allocation2 + $0x3] sm:$0xff] %v422_v35  ;;  %v423_v39 = vadd.f32 %v395_v38, %v288_v34 }
  0xfe   : > { %432 = vst [vmem:[#allocation2 + $0x1b] sm:$0xff] %v425_v37 }
  0xff   : > { %430 = vst [vmem:[#allocation2 + $0xb] sm:$0xff] %v423_v39 }
 0x101   : > { %v1752_v42 = vpop.f32.mrb[4].mxu1 }
 0x102   : > { %v428_v43 = vadd.f32 %v1752_v42, %v293_v40  ;;  %v408_v44 = vpop.f32.mrb[5].mxu1 }
 0x103   : > { %v426_v46 = vadd.f32 %v408_v44, %v291_v41  ;;  %v1753_v47 = vpop.f32.mrb[6].mxu1 }
 0x104   : > { %435 = vst [vmem:[#allocation2 + $0x33] sm:$0xf] %v428_v43  ;;  %v411_v48 = vpop.f32.mrb[7].mxu1  ;;  %v1800_v50 = vpop.f32.mrb[4].mxu0  ;;  %v489_v57 = vld [vmem:[#allocation2 + $0x2] sm:$0xff] }
 0x105   : > { %433 = vst [vmem:[#allocation2 + $0x23] sm:$0xff] %v426_v46  ;;  %v427_v49 = vadd.f32 %v411_v48, %v292_v45  ;;  %v814_v51 = vpop.f32.mrb[5].mxu0  ;;  %v492_v60 = vld [vmem:[#allocation2 + $0x1a] sm:$0xff] }
 0x106   : > { %v1801_v52 = vpop.f32.mrb[6].mxu0  ;;  %v491_v53 = vld [vmem:[#allocation2 + $0x12] sm:$0xff]  ;;  %v490_v0 = vld [vmem:[#allocation2 + $0xa] sm:$0xff] }
 0x107   : > { %434 = vst [vmem:[#allocation2 + $0x2b] sm:$0xff] %v427_v49  ;;  %v817_v13 = vpop.f32.mrb[7].mxu0 }
 0x10c   : > { %v493_v5 = vld [vmem:[#allocation2 + $0x22] sm:$0xff] }
 0x10e   : > { %v495_v18 = vld [vmem:[#allocation2 + $0x32] sm:$0x1f]  ;;  %v494_v11 = vld [vmem:[#allocation2 + $0x2a] sm:$0xff] }
 0x119   : > { %v1772_v54 = vpop.f32.mrb[8].mxu1 }
 0x11a   : > { %v627_v55 = vadd.f32 %v1772_v54, %v491_v53  ;;  %v595_v58 = vpop.f32.mrb[9].mxu1 }
 0x11b   : > { %v625_v59 = vadd.f32 %v595_v58, %v489_v57  ;;  %v1773_v61 = vpop.f32.mrb[10].mxu1 }
 0x11c   : > { %634 = vst [vmem:[#allocation2 + $0x12] sm:$0xff] %v627_v55  ;;  %v628_v62 = vadd.f32 %v1773_v61, %v492_v60  ;;  %v598_v1 = vpop.f32.mrb[11].mxu1  ;;  %v1587_v55 = vld [vmem:[%s2209_s2] ss:$0 sm:$0xff] }
 0x11d   : > { %632 = vst [vmem:[#allocation2 + $0x2] sm:$0xff] %v625_v59  ;;  %v626_v2 = vadd.f32 %v598_v1, %v490_v0 }
 0x11e   : > { %635 = vst [vmem:[#allocation2 + $0x1a] sm:$0xff] %v628_v62 }
 0x11f   : > { %633 = vst [vmem:[#allocation2 + $0xa] sm:$0xff] %v626_v2 }
 0x121   : > { %v1776_v3 = vpop.f32.mrb[12].mxu1 }
 0x122   : > { %v631_v4 = vadd.f32 %v1776_v3, %v495_v18  ;;  %v611_v6 = vpop.f32.mrb[13].mxu1  ;;  %v1824_v7 = vpop.f32.mrb[8].mxu0 }
 0x123   : > { %v629_v8 = vadd.f32 %v611_v6, %v493_v5  ;;  %v1777_v9 = vpop.f32.mrb[14].mxu1  ;;  %v1053_v10 = vpop.f32.mrb[9].mxu0 }
 0x124   : > { %638 = vst [vmem:[#allocation2 + $0x32] sm:$0x1f] %v631_v4  ;;  %v614_v12 = vpop.f32.mrb[15].mxu1  ;;  %v1825_v14 = vpop.f32.mrb[10].mxu0  ;;  %v692_v31 = vld [vmem:[#allocation2 + $0x1] sm:$0xff] }
 0x125   : > { %636 = vst [vmem:[#allocation2 + $0x22] sm:$0xff] %v629_v8  ;;  %v630_v15 = vadd.f32 %v614_v12, %v494_v11  ;;  %v1056_v16 = vpop.f32.mrb[11].mxu0  ;;  %v695_v36 = vld [vmem:[#allocation2 + $0x19] sm:$0xff] }
 0x126   : > { %v694_v27 = vld [vmem:[#allocation2 + $0x11] sm:$0xff]  ;;  %v693_v40 = vld [vmem:[#allocation2 + $0x9] sm:$0xff] }
 0x127   : > { %637 = vst [vmem:[#allocation2 + $0x2a] sm:$0xff] %v630_v15 }
 0x12c   : > { %v696_v17 = vld [vmem:[#allocation2 + $0x21] sm:$0xff] }
 0x12d   : > { %v832_v19 = vadd.f32 %v814_v51, %v696_v17 }
 0x12e   : > { %v698_v20 = vld [vmem:[#allocation2 + $0x31] sm:$0x3f]  ;;  %v697_v21 = vld [vmem:[#allocation2 + $0x29] sm:$0xff] }
 0x12f   : > { %v834_v22 = vadd.f32 %v1800_v50, %v698_v20  ;;  %v1071_v56 = vadd.f32 %v1053_v10, %v832_v19  ;;  %v833_v63 = vadd.f32 %v817_v13, %v697_v21 }
 0x131   : > { %841 = vst [vmem:[#allocation2 + $0x31] sm:$0x3f] %v834_v22  ;;  %v1072_v23 = vadd.f32 %v1056_v16, %v833_v63 }
 0x138   : > { %v901_v24 = vld [vmem:[#allocation2 + $0x31] sm:$0x1f] }
 0x139   : > { %v1073_v25 = vadd.f32 %v1824_v7, %v901_v24  ;;  %v1848_v26 = vpop.f32.mrb[16].mxu1 }
 0x13a   : > { %v1844_v28 = vpop.f32.mrb[0].mxu0  ;;  %v1272_v29 = vpop.f32.mrb[17].mxu1 }
 0x13b   : > { %1080 = vst [vmem:[#allocation2 + $0x31] sm:$0x1f] %v1073_v25  ;;  %v1868_v30 = vadd.f32 %v1844_v28, %v694_v27  ;;  %v1256_v32 = vpop.f32.mrb[1].mxu0  ;;  %v1290_v33 = vadd.f32 %v1272_v29, %v1071_v56  ;;  %v1849_v34 = vpop.f32.mrb[18].mxu1  ;;  %v1588_v29 = vld [vmem:[%s2209_s2 + $0x1] ss:$0 sm:$0xff] }
 0x13c   : > { %v1871_v35 = vadd.f32 %v1256_v32, %v692_v31  ;;  %v1845_v37 = vpop.f32.mrb[2].mxu0  ;;  %v1275_v38 = vpop.f32.mrb[19].mxu1 }
 0x13d   : > { %1295 = vst [vmem:[#allocation2 + $0x11] sm:$0xff] %v1868_v30  ;;  %v1874_v39 = vadd.f32 %v1845_v37, %v695_v36  ;;  %v1259_v41 = vpop.f32.mrb[3].mxu0  ;;  %1297 = vst [vmem:[#allocation2 + $0x21] sm:$0xff] %v1290_v33  ;;  %v1291_v42 = vadd.f32 %v1275_v38, %v1072_v23  ;;  %v1589_v33 = vld [vmem:[%s2209_s2 + $0x2] ss:$0 sm:$0xff] }
 0x13e   : > { %1293 = vst [vmem:[#allocation2 + $0x1] sm:$0xff] %v1871_v35  ;;  %v1877_v43 = vadd.f32 %v1259_v41, %v693_v40 }
 0x13f   : > { %1296 = vst [vmem:[#allocation2 + $0x19] sm:$0xff] %v1874_v39  ;;  %1298 = vst [vmem:[#allocation2 + $0x29] sm:$0xff] %v1291_v42 }
 0x140   : > { %1294 = vst [vmem:[#allocation2 + $0x9] sm:$0xff] %v1877_v43 }
 0x142   : > { %v1140_v44 = vld [vmem:[#allocation2 + $0x31] sm:$0xf] }
 0x143   : > { %v1292_v45 = vadd.f32 %v1848_v26, %v1140_v44 }
 0x145   : > { %1299 = vst [vmem:[#allocation2 + $0x31] sm:$0xf] %v1292_v45 }
 0x146   : > { %v1302_v46 = vld [vmem:[#allocation2 + $0x18] ss:$3 sm:$0xff]  ;;  %v1308_v47 = vld [vmem:[#allocation2 + $0x19] ss:$3 sm:$0xff]  ;;  %v1314_v13 = vld [vmem:[#allocation2 + $0x1a] ss:$3 sm:$0xff] }
 0x147   : > { %v1300_v48 = vld [vmem:[#allocation2] ss:$3 sm:$0xff]  ;;  %v1306_v49 = vld [vmem:[#allocation2 + $0x1] ss:$3 sm:$0xff]  ;;  %v1318_v50 = vmax.f32 %v1302_v46, %v1308_v47  ;;  %v1312_v52 = vld [vmem:[#allocation2 + $0x2] ss:$3 sm:$0xff] }
 0x148   : > { %v1317_v51 = vmax.f32 %v1300_v48, %v1306_v49 }
 0x149   : > { %v1321_v54 = vmax.f32 %v1318_v50, %v1314_v13 }
 0x14a   : > { %v1320_v53 = vmax.f32 %v1317_v51, %v1312_v52 }
 0x14b   : > { %v1329_v62 = vadd.f32 %v1587_v55, %v1321_v54 }
 0x14c   : > { %v1304_v57 = vld [vmem:[#allocation2 + $0x30] ss:$3 sm:$0x3]  ;;  %v1310_v58 = vld [vmem:[#allocation2 + $0x31] ss:$3 sm:$0x3]  ;;  %v1328_v60 = vadd.f32 %v1587_v55, %v1320_v53 }
 0x14d   : > { %v1319_v59 = vmax.f32 %v1304_v57, %v1310_v58  ;;  %v1316_v61 = vld [vmem:[#allocation2 + $0x32] ss:$3 sm:$0x3] }
 0x14e   : > { %v1331_v2 = vadd.f32 %v1329_v62, %v1328_v60 }
 0x14f   : > { %v1322_v0 = vmax.f32 %v1319_v59, %v1316_v61 }
 0x151   : > { %v1330_v1 = vadd.f32 %v1587_v55, %v1322_v0 }
 0x153   : > { %v1333_v18 = vsel %vm1332_vm15, %v1330_v1, 0.0 }
 0x154   : > { %v1334_v3 = vadd.f32 %v1333_v18, %v1331_v2 }
 0x156   : > { %v1335_v4 = vrot.slane %v1334_v3, 4 }
 0x158   : > { %v1336_v5 = vadd.f32 %v1335_v4, %v1334_v3 }
 0x15a   : > { %v1337_v6 = vrot.slane %v1336_v5, 2 }
 0x15c   : > { %v1338_v7 = vadd.f32 %v1337_v6, %v1336_v5 }
 0x15e   : > { %v1339_v8 = vrot.slane %v1338_v7, 1 }
 0x160   : > { %v1340_v9 = vadd.f32 %v1339_v8, %v1338_v7 }
 0x162   : > { %v1342_v10 = vmul.f32 0.055555556, %v1340_v9 }
 0x164   : > { %v1343_v11 = vsub.f32 %v1328_v60, %v1342_v10  ;;  %v1344_v12 = vsub.f32 %v1329_v62, %v1342_v10  ;;  %v1345_v14 = vsub.f32 %v1330_v1, %v1342_v10 }
 0x166   : > { %v1346_v15 = vmul.f32 %v1343_v11, %v1343_v11  ;;  %v1347_v16 = vmul.f32 %v1344_v12, %v1344_v12  ;;  %v1348_v17 = vmul.f32 %v1345_v14, %v1345_v14 }
 0x168   : > { %v1349_v19 = vadd.f32 %v1347_v16, %v1346_v15  ;;  %v1350_v20 = vsel %vm1332_vm15, %v1348_v17, 0.0 }
 0x16a   : > { %v1351_v21 = vadd.f32 %v1350_v20, %v1349_v19 }
 0x16c   : > { %v1352_v22 = vrot.slane %v1351_v21, 4 }
 0x16e   : > { %v1353_v56 = vadd.f32 %v1352_v22, %v1351_v21 }
 0x170   : > { %v1354_v63 = vrot.slane %v1353_v56, 2 }
 0x172   : > { %v1355_v23 = vadd.f32 %v1354_v63, %v1353_v56 }
 0x174   : > { %v1356_v24 = vrot.slane %v1355_v23, 1 }
 0x176   : > { %v1357_v25 = vadd.f32 %v1356_v24, %v1355_v23 }
 0x178   : > { %v1358_v26 = vmul.f32 0.055555556, %v1357_v25 }
 0x17a   : > { %v1359_v27 = vadd.f32 1e-05, %v1358_v26 }
 0x17c   : > { %1937 = vrsqrt.f32 %v1359_v27 }
 0x186   : > { %v1938_v28 = vpop.eup %1937 }
 0x187   : > { %v1361_v30 = vmul.f32 %v1938_v28, %v1343_v11  ;;  %v1362_v31 = vmul.f32 %v1938_v28, %v1344_v12  ;;  %v1363_v32 = vmul.f32 %v1938_v28, %v1345_v14 }
 0x189   : > { %v1369_v34 = vmul.f32 %v1588_v29, %v1361_v30  ;;  %v1370_v35 = vmul.f32 %v1588_v29, %v1362_v31  ;;  %v1371_v36 = vmul.f32 %v1588_v29, %v1363_v32 }
 0x18b   : > { %v1377_v37 = vadd.f32 %v1589_v33, %v1369_v34  ;;  %v1378_v38 = vadd.f32 %v1589_v33, %v1370_v35  ;;  %v1379_v39 = vadd.f32 %v1589_v33, %v1371_v36 }
 0x18d   : > { %vm1380_vm0 = vcmp.ge.f32.partialorder %v1377_v37, 0.0  ;;  %vm1381_vm1 = vcmp.ge.f32.partialorder %v1378_v38, 0.0  ;;  %vm1382_vm2 = vcmp.ge.f32.partialorder %v1379_v39, 0.0  ;;  %v1383_v40 = vmul.f32 0.2, %v1377_v37 }
 0x18e   : > { %v1384_v41 = vmul.f32 0.2, %v1378_v38  ;;  %v1385_v42 = vmul.f32 0.2, %v1379_v39 }
 0x18f   : > { %v1386_v43 = vsel %vm1380_vm0, %v1377_v37, %v1383_v40 }
 0x190   : > { %v1387_v44 = vsel %vm1381_vm1, %v1378_v38, %v1384_v41  ;;  %v1388_v45 = vsel %vm1382_vm2, %v1379_v39, %v1385_v42 }
 0x191   : > { %v1598_v46 = vpack.c.bf16 %v1388_v45, %v1388_v45  ;;  %v1658_v47 = vpack.c.bf16 %v1387_v44, %v1386_v43 }
 0x193   : > { %1659 = vst [vmem:[%s214_s20] sm:$0xff] %v1658_v47   ;;  %1404 = vst [vmem:[%s214_s20 + $0x8] sm:$0x1] %v1598_v46 }
 0x194 PF: > { %s14_s15 = sadd.s32 1, %s1945_s15  }
 0x195   : > { %p11_p4 = scmp.ge.s32.totalorder %s14_s15, 4  }
 0x197   :  { %13 = sbr.rel (!%p11_p4) target bundleno = 1 (0x1), region = 81 }

</bundles_post_ra>
